<compile_context>
chip_gen: v6e
topology: v6e:2x2x1
jax: 0.10.0
libtpu: 0.0.40
codegen_flags: <defaults>
</compile_context>

<pallas_src>
import functools

import jax
import jax.numpy as jnp
from jax.experimental import pallas as pl
from jax.experimental.pallas import tpu as pltpu


def _round_up(v, m):
    return (v + m - 1) // m * m


def _hetero_basis_kernel(x_ref, xsrc_ref, s_ref, wedge_ref, wroot_ref,
                         wmsg_ref, out_ref):
    """Grid = (n_tiles, e_tiles); e (axis 1) is the reduction axis.

    x_ref    : [TN, Fin]    bf16  destination-node features (per n-tile)
    xsrc_ref : [TE, Fin]    bf16  gathered source features  (per e-tile)
    s_ref    : [TN, TE]     bf16  one-hot dst scatter tile
    wedge_ref: [TE, B]      f32   edge_type_weight[b, edge_type[e]]
    wroot_ref: [Fin, Fp]    bf16  sum_b W_root[b]  (Fout padded to Fp)
    wmsg_ref : [Fin, B*Fp]  bf16  all bases' W_msg side by side
    out_ref  : [TN, Fp]     f32   resident accumulator across e-tiles
    """
    e = pl.program_id(1)

    # Root / self transform, hoisted over bases; once per output row-tile.
    @pl.when(e == 0)
    def _():
        out_ref[...] = jnp.dot(x_ref[...], wroot_ref[...],
                               preferred_element_type=jnp.float32)

    # One wide MXU matmul covering every basis: [TE, Fin] @ [Fin, B*Fp].
    msg_all = jnp.dot(xsrc_ref[...], wmsg_ref[...],
                      preferred_element_type=jnp.float32)

    # message-forward hook + reduction over bases (f32 on the VPU):
    #   msg[e, :] = sum_b edge_type_weight[b, edge_type[e]] * msg_all[e, chunk_b]
    we = wedge_ref[...]                               # [TE, B] f32
    n_bases = we.shape[1]
    fp = out_ref.shape[1]
    msg = we[:, 0:1] * msg_all[:, 0:fp]
    for b in range(1, n_bases):                       # static unroll, B tiny
        msg = msg + we[:, b:b + 1] * msg_all[:, b * fp:(b + 1) * fp]

    # Sum-aggregation to destination rows: single scatter matmul per e-tile.
    out_ref[...] += jnp.dot(s_ref[...], msg.astype(s_ref.dtype),
                            preferred_element_type=jnp.float32)


@functools.partial(jax.jit, static_argnames=("num_nodes", "tile_n", "tile_e"))
def hetero_basis_conv(x, edge_index, edge_type, w_root, w_msg,
                      edge_type_weight, *, num_nodes, tile_n=128, tile_e=256):
    """x: [N,Fin] f32, edge_index: [2,E] i32, edge_type: [E] i32,
    w_root/w_msg: [B,Fin,Fout] f32, edge_type_weight: [B,num_relations] f32."""
    N, Fin = x.shape
    assert num_nodes == N
    B, _, Fout = w_root.shape
    src = edge_index[0]
    dst = edge_index[1]
    E = edge_type.shape[0]

    fp = _round_up(Fout, 128)                         # lane-dense output cols
    tile_n = _round_up(max(8, min(tile_n, _round_up(N, 8))), 8)
    tile_e = _round_up(max(128, min(tile_e, _round_up(E, 128))), 128)
    n_pad = _round_up(N, tile_n)
    e_pad = _round_up(E, tile_e)

    cdt = jnp.bfloat16                                # MXU operand dtype

    # --- glue (layout / gathers / one-hot), done in XLA outside the kernel ---
    # Root weights summed over bases (algebraic hoist), Fout zero-padded.
    w_root_sum = jnp.pad(jnp.sum(w_root, axis=0),
                         ((0, 0), (0, fp - Fout))).astype(cdt)       # [Fin, fp]
    # Per-basis message weights laid side by side: [Fin, B*fp].
    w_msg_all = jnp.pad(jnp.transpose(w_msg, (1, 0, 2)),
                        ((0, 0), (0, 0), (0, fp - Fout)))
    w_msg_all = w_msg_all.reshape(Fin, B * fp).astype(cdt)

    # Node / gathered-source features, zero-padded rows.
    x_p = jnp.pad(x, ((0, n_pad - N), (0, 0))).astype(cdt)           # [n_pad, Fin]
    x_src = jnp.pad(jnp.take(x, src, axis=0),
                    ((0, e_pad - E), (0, 0))).astype(cdt)            # [e_pad, Fin]

    # One-hot dst scatter matrix (0/1 exact in bf16); padded edges map to -1 -> 0.
    dst_p = jnp.pad(dst, (0, e_pad - E), constant_values=-1)
    scatter = jax.nn.one_hot(dst_p, n_pad, dtype=cdt, axis=0)        # [n_pad, e_pad]

    # Hook weights: edge_type_weight.view(-1)[edge_type]; one column per basis.
    w_edge = jnp.pad(edge_type_weight[:, edge_type].T,
                     ((0, e_pad - E), (0, 0))).astype(jnp.float32)   # [e_pad, B]

    grid = (n_pad // tile_n, e_pad // tile_e)

    grid_spec = pltpu.PrefetchScalarGridSpec(
        num_scalar_prefetch=0,
        grid=grid,
        in_specs=[
            pl.BlockSpec((tile_n, Fin), lambda n, e: (n, 0)),        # x
            pl.BlockSpec((tile_e, Fin), lambda n, e: (e, 0)),        # x_src
            pl.BlockSpec((tile_n, tile_e), lambda n, e: (n, e)),     # scatter
            pl.BlockSpec((tile_e, B), lambda n, e: (e, 0)),          # w_edge
            pl.BlockSpec((Fin, fp), lambda n, e: (0, 0)),            # W_root_sum
            pl.BlockSpec((Fin, B * fp), lambda n, e: (0, 0)),        # W_msg_all
        ],
        out_specs=pl.BlockSpec((tile_n, fp), lambda n, e: (n, 0)),
    )

    out = pl.pallas_call(
        _hetero_basis_kernel,
        out_shape=jax.ShapeDtypeStruct((n_pad, fp), jnp.float32),
        grid_spec=grid_spec,
        compiler_params=pltpu.CompilerParams(
            dimension_semantics=("parallel", "arbitrary"),
            vmem_limit_bytes=32 * 1024 * 1024),
    )(x_p, x_src, scatter, w_edge, w_root_sum, w_msg_all)

    return out[:N, :Fout]


def _reference(x, edge_index, edge_type, w_root, w_msg, edge_type_weight,
               num_nodes):
    src, dst = edge_index[0], edge_index[1]
    x_src = x[src]
    out = None
    for b in range(w_root.shape[0]):
        msg = x_src @ w_msg[b]
        msg = edge_type_weight[b][edge_type][:, None] * msg
        aggr = jax.ops.segment_sum(msg, dst, num_segments=num_nodes)
        res = x @ w_root[b] + aggr
        out = res if out is None else out + res
    return out


def _glorot(key, shape):
    fan_in, fan_out = shape[-2], shape[-1]
    bound = (6.0 / (fan_in + fan_out)) ** 0.5
    return jax.random.uniform(key, shape, jnp.float32, -bound, bound)


def _xavier_1xr(key, shape):
    # xavier_uniform_ on a (1, num_relations) parameter, per basis.
    bound = (6.0 / (1 + shape[-1])) ** 0.5
    return jax.random.uniform(key, shape, jnp.float32, -bound, bound)


if __name__ == "__main__":
    key = jax.random.PRNGKey(0)
    N, E, Fin, Fout = 256, 512, 16, 32
    num_relations, num_bases = 4, 3

    k_x, k_src, k_dst, k_et, k_wr, k_wm, k_ew = jax.random.split(key, 7)

    x = jax.random.normal(k_x, (N, Fin), jnp.float32)
    src = jax.random.randint(k_src, (E,), 0, N, jnp.int32)
    dst = jax.random.randint(k_dst, (E,), 0, N, jnp.int32)
    edge_index = jnp.stack([src, dst], axis=0)                        # [2, E]
    edge_type = jax.random.randint(k_et, (E,), 0, num_relations, jnp.int32)

    # Per-basis parameters (deterministic synthetic init; no checkpoint load).
    w_root = _glorot(k_wr, (num_bases, Fin, Fout))
    w_msg = _glorot(k_wm, (num_bases, Fin, Fout))
    edge_type_weight = _xavier_1xr(k_ew, (num_bases, num_relations))  # [B, R]

    out = hetero_basis_conv(x, edge_index, edge_type, w_root, w_msg,
                            edge_type_weight, num_nodes=N)
    out = jax.block_until_ready(out)

    ref = _reference(x, edge_index, edge_type, w_root, w_msg,
                     edge_type_weight, N)

    assert out.shape == (N, Fout) and out.dtype == jnp.float32
    # bf16 matmul operands (f32 accumulation) -> compare with bf16-appropriate tolerance.
    scale = float(jnp.max(jnp.abs(ref)))
    err = float(jnp.max(jnp.abs(out - ref)))
    assert err <= 5e-2 * scale + 5e-2, f"mismatch vs reference: err={err}, scale={scale}"

    # TODO(synk): the hook's runtime check (num messages == num original edges) is a
    # Python-level ValueError in PyG and is not reproduced inside the kernel.
    print("KERNEL_OK")
</pallas_src>

<mosaic_0001>
module attributes {stable_mosaic.version = 11 : i64} {
  func.func @_hetero_basis_kernel(%arg0: i32, %arg1: i32, %arg2: memref<128x16xbf16, #tpu.memory_space<vmem>>, %arg3: memref<256x16xbf16, #tpu.memory_space<vmem>>, %arg4: memref<128x256xbf16, #tpu.memory_space<vmem>>, %arg5: memref<256x3xf32, #tpu.memory_space<vmem>>, %arg6: memref<16x128xbf16, #tpu.memory_space<vmem>>, %arg7: memref<16x384xbf16, #tpu.memory_space<vmem>>, %arg8: memref<128x128xf32, #tpu.memory_space<vmem>>) attributes {dimension_semantics = [#tpu.dimension_semantics<parallel>, #tpu.dimension_semantics<arbitrary>], iteration_bounds = array<i64: 2, 2>, scalar_prefetch = 0 : i64, scratch_operands = 0 : i64, tpu.core_type = #tpu.core_type<tc>, window_params = [{transform_indices = @transform_0, window_bounds = array<i64: 128, 16>}, {transform_indices = @transform_1, window_bounds = array<i64: 256, 16>}, {transform_indices = @transform_2, window_bounds = array<i64: 128, 256>}, {transform_indices = @transform_3, window_bounds = array<i64: 256, 3>}, {pipeline_mode = #tpu.pipeline_mode<synchronous>, transform_indices = @transform_4, window_bounds = array<i64: 16, 128>}, {pipeline_mode = #tpu.pipeline_mode<synchronous>, transform_indices = @transform_5, window_bounds = array<i64: 16, 384>}, {transform_indices = @transform_6, window_bounds = array<i64: 128, 128>}]} {
    %c0_i32 = arith.constant 0 : i32
    %0 = arith.cmpi eq, %arg1, %c0_i32 : i32
    %1 = arith.extui %0 : i1 to i32
    %c0_i32_0 = arith.constant 0 : i32
    %2 = arith.cmpi ne, %1, %c0_i32_0 : i32
    scf.if %2 {
      %c0_13 = arith.constant 0 : index
      %c0_14 = arith.constant 0 : index
      %27 = vector.load %arg2[%c0_13, %c0_14] : memref<128x16xbf16, #tpu.memory_space<vmem>>, vector<128x16xbf16>
      %c0_15 = arith.constant 0 : index
      %c0_16 = arith.constant 0 : index
      %28 = vector.load %arg6[%c0_15, %c0_16] : memref<16x128xbf16, #tpu.memory_space<vmem>>, vector<16x128xbf16>
      %cst_17 = arith.constant dense<0.000000e+00> : vector<128x128xf32>
      %29 = tpu.matmul %27, %28, %cst_17 {dimension_numbers = #tpu.dot_dimension_numbers<[1], [0], [0], [1], [0, 0, 1, 1], [], []>} : vector<128x16xbf16>, vector<16x128xbf16>, vector<128x128xf32> -> vector<128x128xf32>
      %c0_18 = arith.constant 0 : index
      %c0_19 = arith.constant 0 : index
      %30 = vector.load %arg8[%c0_18, %c0_19] : memref<128x128xf32, #tpu.memory_space<vmem>>, vector<128x128xf32>
      tpu.vector_store %arg8[%c0_18, %c0_19], %29 {strides = array<i32>} : memref<128x128xf32, #tpu.memory_space<vmem>>, vector<128x128xf32>,
    } else {
    }
    %c0 = arith.constant 0 : index
    %c0_1 = arith.constant 0 : index
    %3 = vector.load %arg3[%c0, %c0_1] : memref<256x16xbf16, #tpu.memory_space<vmem>>, vector<256x16xbf16>
    %c0_2 = arith.constant 0 : index
    %c0_3 = arith.constant 0 : index
    %4 = vector.load %arg7[%c0_2, %c0_3] : memref<16x384xbf16, #tpu.memory_space<vmem>>, vector<16x384xbf16>
    %cst = arith.constant dense<0.000000e+00> : vector<256x384xf32>
    %5 = tpu.matmul %3, %4, %cst {dimension_numbers = #tpu.dot_dimension_numbers<[1], [0], [0], [1], [0, 0, 1, 1], [], []>} : vector<256x16xbf16>, vector<16x384xbf16>, vector<256x384xf32> -> vector<256x384xf32>
    %c0_4 = arith.constant 0 : index
    %c0_5 = arith.constant 0 : index
    %6 = vector.load %arg5[%c0_4, %c0_5] : memref<256x3xf32, #tpu.memory_space<vmem>>, vector<256x3xf32>
    %7 = vector.extract_strided_slice %6 {offsets = [0, 0], sizes = [256, 1], strides = [1, 1]} : vector<256x3xf32> to vector<256x1xf32>
    %8 = vector.extract_strided_slice %5 {offsets = [0, 0], sizes = [256, 128], strides = [1, 1]} : vector<256x384xf32> to vector<256x128xf32>
    %9 = vector.broadcast %7 : vector<256x1xf32> to vector<256x128xf32>
    %10 = arith.mulf %9, %8 : vector<256x128xf32>
    %11 = vector.extract_strided_slice %6 {offsets = [0, 1], sizes = [256, 1], strides = [1, 1]} : vector<256x3xf32> to vector<256x1xf32>
    %12 = vector.extract_strided_slice %5 {offsets = [0, 128], sizes = [256, 128], strides = [1, 1]} : vector<256x384xf32> to vector<256x128xf32>
    %13 = vector.broadcast %11 : vector<256x1xf32> to vector<256x128xf32>
    %14 = arith.mulf %13, %12 : vector<256x128xf32>
    %15 = arith.addf %10, %14 : vector<256x128xf32>
    %16 = vector.extract_strided_slice %6 {offsets = [0, 2], sizes = [256, 1], strides = [1, 1]} : vector<256x3xf32> to vector<256x1xf32>
    %17 = vector.extract_strided_slice %5 {offsets = [0, 256], sizes = [256, 128], strides = [1, 1]} : vector<256x384xf32> to vector<256x128xf32>
    %18 = vector.broadcast %16 : vector<256x1xf32> to vector<256x128xf32>
    %19 = arith.mulf %18, %17 : vector<256x128xf32>
    %20 = arith.addf %15, %19 : vector<256x128xf32>
    %c0_6 = arith.constant 0 : index
    %c0_7 = arith.constant 0 : index
    %21 = vector.load %arg8[%c0_6, %c0_7] : memref<128x128xf32, #tpu.memory_space<vmem>>, vector<128x128xf32>
    %c0_8 = arith.constant 0 : index
    %c0_9 = arith.constant 0 : index
    %22 = vector.load %arg4[%c0_8, %c0_9] : memref<128x256xbf16, #tpu.memory_space<vmem>>, vector<128x256xbf16>
    %23 = arith.truncf %20 : vector<256x128xf32> to vector<256x128xbf16>
    %cst_10 = arith.constant dense<0.000000e+00> : vector<128x128xf32>
    %24 = tpu.matmul %22, %23, %cst_10 {dimension_numbers = #tpu.dot_dimension_numbers<[1], [0], [0], [1], [0, 0, 1, 1], [], []>} : vector<128x256xbf16>, vector<256x128xbf16>, vector<128x128xf32> -> vector<128x128xf32>
    %25 = arith.addf %21, %24 : vector<128x128xf32>
    %c0_11 = arith.constant 0 : index
    %c0_12 = arith.constant 0 : index
    %26 = vector.load %arg8[%c0_11, %c0_12] : memref<128x128xf32, #tpu.memory_space<vmem>>, vector<128x128xf32>
    tpu.vector_store %arg8[%c0_11, %c0_12], %25 {strides = array<i32>} : memref<128x128xf32, #tpu.memory_space<vmem>>, vector<128x128xf32>,
    return
  }
  func.func @transform_0(%arg0: i32, %arg1: i32) -> (i32, i32) {
    %c0_i32 = arith.constant 0 : i32
    %c0_i32_0 = arith.constant 0 : i32
    return %arg0, %c0_i32 : i32, i32
  }
  func.func @transform_1(%arg0: i32, %arg1: i32) -> (i32, i32) {
    %c0_i32 = arith.constant 0 : i32
    %c0_i32_0 = arith.constant 0 : i32
    return %arg1, %c0_i32 : i32, i32
  }
  func.func @transform_2(%arg0: i32, %arg1: i32) -> (i32, i32) {
    %c0_i32 = arith.constant 0 : i32
    return %arg0, %arg1 : i32, i32
  }
  func.func @transform_3(%arg0: i32, %arg1: i32) -> (i32, i32) {
    %c0_i32 = arith.constant 0 : i32
    %c0_i32_0 = arith.constant 0 : i32
    return %arg1, %c0_i32 : i32, i32
  }
  func.func @transform_4(%arg0: i32, %arg1: i32) -> (i32, i32) {
    %c0_i32 = arith.constant 0 : i32
    %c0_i32_0 = arith.constant 0 : i32
    %c0_i32_1 = arith.constant 0 : i32
    return %c0_i32, %c0_i32_0 : i32, i32
  }
  func.func @transform_5(%arg0: i32, %arg1: i32) -> (i32, i32) {
    %c0_i32 = arith.constant 0 : i32
    %c0_i32_0 = arith.constant 0 : i32
    %c0_i32_1 = arith.constant 0 : i32
    return %c0_i32, %c0_i32_0 : i32, i32
  }
  func.func @transform_6(%arg0: i32, %arg1: i32) -> (i32, i32) {
    %c0_i32 = arith.constant 0 : i32
    %c0_i32_0 = arith.constant 0 : i32
    return %arg0, %c0_i32 : i32, i32
  }
}

</mosaic_0001>

<bundles_post_ra>
// kernel: hetero_basis_conv.1
= control target key start
LH: loop header
LB: loop body
LE: loop exit
PB: predicated region body
PF: predicated region fallthrough
CT: control target
= control target key end

     0   :  { %s3502_s0 = inlined_call_operand.vmem [shape: bf16[256,16], index: 0, kind: input, shape index: {}]   ;;  %s3503_s1 = inlined_call_operand.vmem [shape: bf16[512,16], index: 1, kind: input, shape index: {}]   ;;  %s3504_s2 = inlined_call_operand.vmem [shape: bf16[256,512], index: 2, kind: input, shape index: {}]   ;;  %s3505_s3 = inlined_call_operand.vmem [shape: f32[512,3], index: 3, kind: input, shape index: {}]   ;;  %s3506_s4 = inlined_call_operand.vmem [shape: bf16[16,128], index: 4, kind: input, shape index: {}]   ;;  %s3507_s5 = inlined_call_operand.vmem [shape: bf16[16,384], index: 5, kind: input, shape index: {}]   ;;  %s3508_s6 = inlined_call_operand.vmem [shape: f32[256,128], index: 6, kind: output, shape index: {}]  }
   0x1   :  { %3523 = sst [smem:[#allocation59_spill]] %s3504_s2 }
   0x2   :  { %s2648_s21 = smov 0   ;;  %s2650_s22 = smov 0  }
   0x3   :  { %s2652_s23 = smov 0   ;;  %s2654_s24 = smov 0  }
   0x4   :  { %s2656_s25 = smov 0   ;;  %s2658_s26 = smov 0  }
   0x5   :  { %s2660_s27 = smov 0  }
   0x6 LB: > { %s25_s28 = sadd.s32 1, %s2600_s25  ;;  %s28_s29 = sadd.s32 1, %s2604_s26  ;;  %s2608_s27 = sphi %s2660_s27, %s16_s27   ;;  %s2604_s26 = sphi %s2658_s26, %s3651_s26   ;;  %s2600_s25 = sphi %s2656_s25, %s3650_s25   ;;  %s2596_s24 = sphi %s2654_s24, %s3649_s24   ;;  %s2592_s23 = sphi %s2652_s23, %s3648_s23   ;;  %s2588_s22 = sphi %s2650_s22, %s3647_s22   ;;  %s2584_s21 = sphi %s2648_s21, %s3646_s21  }
   0x7   : > { %p26_p0 = scmp.ge.s32.totalorder %s25_s28, 2  ;;  %p96_p1 = scmp.ne.s32.totalorder %s2588_s22, %s2584_s21 }
   0x8   : > { %p97_p2 = scmp.eq.s32.totalorder %s2608_s27, 0  ;;  %s89_s9 = sadd.s32 1, %s2588_s22 }
   0x9   : > { %s3653_s28 = smov (%p26_p0, %s25_s28), 0  ;;  %s3655_s29 = smov (!%p26_p0, %s28_s29), %s2604_s26 }
   0xa   : > { %p98_p3 = por %p97_p2, %p96_p1  ;;  %p30_p4 = scmp.ge.s32.totalorder %s3655_s29, 2 }
   0xb   : > { %s85_s30 = ssub.s32 %s2600_s25, %s3653_s28  ;;  %p2157_p6 = scmp.ge.s32.totalorder %s2608_s27, 4 }
   0xc   : > { %s3657_s29 = smov (%p30_p4, %s3655_s29), 0 }
   0xd   : > { %3524 = sst [smem:[#allocation3_spill]] %s3657_s29  ;;  %s84_s7 = ssub.s32 %s2604_s26, %s3657_s29 }
   0xe   : > { %s86_s8 = sor.u32 %s85_s30, %s84_s7  ;;  %222 = sbr.rel (%p2157_p6) target bundleno = 37 (0x25), region = 24 }
   0xf   : > { %p87_p5 = scmp.eq.s32.totalorder %s86_s8, 0 }
  0x11   : > { %s2699_s10 = scalar_select %p87_p5, %s2588_s22, %s89_s9  }
  0x13   : > { %243 = sbr.rel (!%p98_p3) target bundleno = 37 (0x25), region = 36  ;;  %s245_s11 = sand.u32 (%p98_p3), 1, %s2588_s22  }
  0x14   : > { %s2160_s12 = sshll.u32 (%p98_p3), %s2600_s25, 1  ;;  %s2158_s13 = sshll.u32 (%p98_p3), %s245_s11, 7 }
  0x15   : > { %s2260_s14 = sshll.u32 (%p98_p3), %s2604_s26, 6  ;;  %s3525_s2 = sld [smem:[#allocation59_spill]] (%p98_p3) }
  0x16   : > { %s251_s15 = sadd.s32 (%p98_p3), %s2260_s14, %s2160_s12  ;;  %s247_s20 = scalar_lea.vmem (%p98_p3), [#allocation2], %s2158_s13 }
  0x17   : > { %s2162_s16 = sshll.u32 (%p98_p3), %s251_s15, 2 }
  0x1b   : > { %s2708_s19 = scalar_lea.vmem %s3525_s2, %s2162_s16 }
  0x1c   : > { %v312_v0 = vld [vmem:[%s2708_s19] sm:$0xff]  ;;  %v314_v1 = vld [vmem:[%s2708_s19 + $0x10] sm:$0xff] }
  0x1d   : > { %v316_v2 = vld [vmem:[%s2708_s19 + $0x20] sm:$0xff]  ;;  %313 = vst [vmem:[%s247_s20] sm:$0xff] %v312_v0  ;;  %315 = vst [vmem:[%s247_s20 + $0x8] sm:$0xff] %v314_v1  ;;  %v318_v3 = vld [vmem:[%s2708_s19 + $0x30] sm:$0xff] }
  0x1e   : > { %317 = vst [vmem:[%s247_s20 + $0x10] sm:$0xff] %v316_v2  ;;  %v320_v4 = vld [vmem:[%s2708_s19 + $0x40] sm:$0xff]  ;;  %v322_v5 = vld [vmem:[%s2708_s19 + $0x50] sm:$0xff]  ;;  %319 = vst [vmem:[%s247_s20 + $0x18] sm:$0xff] %v318_v3 }
  0x1f   : > { %321 = vst [vmem:[%s247_s20 + $0x20] sm:$0xff] %v320_v4  ;;  %323 = vst [vmem:[%s247_s20 + $0x28] sm:$0xff] %v322_v5  ;;  %v324_v6 = vld [vmem:[%s2708_s19 + $0x60] sm:$0xff]  ;;  %v326_v7 = vld [vmem:[%s2708_s19 + $0x70] sm:$0xff] }
  0x20   : > { %v328_v8 = vld [vmem:[%s2708_s19 + $0x80] sm:$0xff]  ;;  %325 = vst [vmem:[%s247_s20 + $0x30] sm:$0xff] %v324_v6  ;;  %327 = vst [vmem:[%s247_s20 + $0x38] sm:$0xff] %v326_v7  ;;  %v330_v9 = vld [vmem:[%s2708_s19 + $0x90] sm:$0xff] }
  0x21   : > { %329 = vst [vmem:[%s247_s20 + $0x40] sm:$0xff] %v328_v8  ;;  %v332_v10 = vld [vmem:[%s2708_s19 + $0xa0] sm:$0xff]  ;;  %v334_v11 = vld [vmem:[%s2708_s19 + $0xb0] sm:$0xff]  ;;  %331 = vst [vmem:[%s247_s20 + $0x48] sm:$0xff] %v330_v9 }
  0x22   : > { %333 = vst [vmem:[%s247_s20 + $0x50] sm:$0xff] %v332_v10  ;;  %335 = vst [vmem:[%s247_s20 + $0x58] sm:$0xff] %v334_v11  ;;  %v336_v12 = vld [vmem:[%s2708_s19 + $0xc0] sm:$0xff]  ;;  %v338_v13 = vld [vmem:[%s2708_s19 + $0xd0] sm:$0xff] }
  0x23   : > { %v340_v14 = vld [vmem:[%s2708_s19 + $0xe0] sm:$0xff]  ;;  %337 = vst [vmem:[%s247_s20 + $0x60] sm:$0xff] %v336_v12  ;;  %339 = vst [vmem:[%s247_s20 + $0x68] sm:$0xff] %v338_v13  ;;  %v342_v15 = vld [vmem:[%s2708_s19 + $0xf0] sm:$0xff] }
  0x24   : > { %341 = vst [vmem:[%s247_s20 + $0x70] sm:$0xff] %v340_v14  ;;  %343 = vst [vmem:[%s247_s20 + $0x78] sm:$0xff] %v342_v15 }
  0x25 PF: > { %p2163_p7 = scmp.ge.s32.totalorder %s2608_s27, 1  ;;  %p357_p8 = scmp.lt.s32.totalorder %s2608_s27, 5 }
  0x27   : > { %p358_p9 = pnand %p2163_p7, %p357_p8 }
  0x29   : > { %361 = sbr.rel (%p358_p9) target bundleno = 937 (0x3a9), region = 78 }
  0x2e   : > { %s364_s30 = sand.u32 1, %s2584_s21   ;;  %s2165_s7 = sshll.u32 %s2596_s24, 4 }
  0x2f   : > { %s2164_s8 = sshll.u32 %s364_s30, 7  ;;  %p409_p10 = scmp.lt.s32.totalorder %s2165_s7, 31 }
  0x30   : > { %s2167_s9 = sshll.u32 %s2592_s23, 5  ;;  %s2749_s13 = scalar_lea.vmem [#allocation2], %s2164_s8 }
  0x31   : > { %s3659_s7 = smov (!%p409_p10, %s2165_s7), 31  ;;  %p415_p11 = scmp.lt.s32.totalorder %s2167_s9, 63 }
  0x32   : > { %s2166_s11 = sshll.u32 %s3659_s7, 2  ;;  %s2172_s12 = sshll.u32 %s3659_s7, 3 }
  0x33   : > { %s412_s15 = scalar_lea.vmem %s3502_s0, %s2166_s11  ;;  %s2737_s18 = scalar_lea.vmem %s3508_s6, %s2172_s12 }
  0x34   : > { %s3661_s9 = smov (!%p415_p11, %s2167_s9), 63  ;;  %p2173_p12 = scmp.ne.s32.totalorder %s2592_s23, 0 }
  0x35   : > { %s2168_s19 = sshll.u32 %s3661_s9, 2  ;;  %s2170_s21 = sshll.u32 %s3661_s9, 3 }
  0x36   : > { %s2742_s30 = scalar_lea.vmem %s3503_s1, %s2168_s19  ;;  %s2747_s7 = scalar_lea.vmem %s3505_s3, %s2170_s21 }
  0x37   : > { %438 = sbr.rel (%p2173_p12) target bundleno = 273 (0x111), region = 86 }
  0x3c   : > { %v2464_v16 = vld [vmem:[%s3506_s4] sm:$0xff]   ;;  %vm503_vm0 = vcmask 130048   ;;  %v2467_v19 = vld [vmem:[%s412_s15 + $0x8] sm:$0xff]   ;;  %v2469_v21 = vld [vmem:[%s412_s15 + $0x10] sm:$0xff]  }
  0x3d   : > { %v2465_v17 = vld [vmem:[%s412_s15] sm:$0xff]   ;;  %2351 = vmatprep.subr.bf16.mxu0 %v2464_v16  ;;  %2403 = vmatprep.subr.bf16.mxu1 %v2464_v16  ;;  %v2468_v20 = vld [vmem:[%s412_s15 + $0x28] sm:$0xff]   ;;  %v2470_v22 = vld [vmem:[%s412_s15 + $0x30] sm:$0xff]  }
  0x3e   : > { %v2466_v18 = vld [vmem:[%s412_s15 + $0x20] sm:$0xff]   ;;  %2352 = vmatpush3.bf16.msra.mxu0 %v2464_v16  ;;  %2404 = vmatpush3.bf16.msra.mxu1 %v2464_v16  ;;  %v2471_v23 = vld [vmem:[%s412_s15 + $0x18] sm:$0xff]  }
  0x3f   : > { %2353 = vmatprep.mubr.msk.bf16.mxu0 %vm503_vm0, %v2465_v17  ;;  %2361 = vmatprep.mubr.msk.bf16.mxu1 %vm503_vm0, %v2466_v18  ;;  %v2472_v24 = vld [vmem:[%s412_s15 + $0x38] sm:$0xff]  }
  0x41   : > { %2354 = vmatmul.mubr.msk.bf16.vlgmr.msra.gmra.mxu0 %vm503_vm0, %v2467_v19  ;;  %2362 = vmatmul.mubr.msk.bf16.vlgmr.msra.gmra.mxu1 %vm503_vm0, %v2468_v20 }
  0x42   : > { %2357 = vmatprep.mubr.msk.bf16.mxu0 %vm503_vm0, %v2469_v21  ;;  %2365 = vmatprep.mubr.msk.bf16.mxu1 %vm503_vm0, %v2470_v22 }
  0x49   : > { %2358 = vmatmul.mubr.msk.bf16.gmra.mxu0 %vm503_vm0, %v2471_v23  ;;  %2366 = vmatmul.mubr.msk.bf16.gmra.mxu1 %vm503_vm0, %v2472_v24 }
 0x101   : > { %v2355_v25 = vpop.f32.mrf.mxu0  ;;  %v2363_v26 = vpop.f32.mrf.mxu1 }
 0x102   : > { %627 = vst [vmem:[%s2737_s18 + $0x10] sm:$0xff] %v2355_v25  ;;  %635 = vst [vmem:[%s2737_s18 + $0x50] sm:$0xff] %v2363_v26 }
 0x103   : > { %v562_v27 = vpop.f32.mrf.mxu0  ;;  %v594_v28 = vpop.f32.mrf.mxu1 }
 0x104   : > { %625 = vst [vmem:[%s2737_s18] sm:$0xff] %v562_v27  ;;  %633 = vst [vmem:[%s2737_s18 + $0x40] sm:$0xff] %v594_v28 }
 0x105   : > { %v2356_v29 = vpop.f32.mrf.mxu0  ;;  %v2364_v30 = vpop.f32.mrf.mxu1 }
 0x106   : > { %628 = vst [vmem:[%s2737_s18 + $0x18] sm:$0xff] %v2356_v29  ;;  %636 = vst [vmem:[%s2737_s18 + $0x58] sm:$0xff] %v2364_v30 }
 0x107   : > { %v565_v31 = vpop.f32.mrf.mxu0  ;;  %v597_v32 = vpop.f32.mrf.mxu1 }
 0x108   : > { %626 = vst [vmem:[%s2737_s18 + $0x8] sm:$0xff] %v565_v31  ;;  %634 = vst [vmem:[%s2737_s18 + $0x48] sm:$0xff] %v597_v32 }
 0x109   : > { %v2359_v33 = vpop.f32.mrf.mxu0  ;;  %v2367_v34 = vpop.f32.mrf.mxu1 }
 0x10a   : > { %631 = vst [vmem:[%s2737_s18 + $0x30] sm:$0xff] %v2359_v33  ;;  %639 = vst [vmem:[%s2737_s18 + $0x70] sm:$0xff] %v2367_v34 }
 0x10b   : > { %v578_v35 = vpop.f32.mrf.mxu0  ;;  %v610_v36 = vpop.f32.mrf.mxu1 }
 0x10c   : > { %629 = vst [vmem:[%s2737_s18 + $0x20] sm:$0xff] %v578_v35  ;;  %637 = vst [vmem:[%s2737_s18 + $0x60] sm:$0xff] %v610_v36 }
 0x10d   : > { %v2360_v37 = vpop.f32.mrf.mxu0  ;;  %v2368_v38 = vpop.f32.mrf.mxu1 }
 0x10e   : > { %632 = vst [vmem:[%s2737_s18 + $0x38] sm:$0xff] %v2360_v37  ;;  %640 = vst [vmem:[%s2737_s18 + $0x78] sm:$0xff] %v2368_v38 }
 0x10f   : > { %v581_v39 = vpop.f32.mrf.mxu0  ;;  %v613_v40 = vpop.f32.mrf.mxu1 }
 0x110   : > { %630 = vst [vmem:[%s2737_s18 + $0x28] sm:$0xff] %v581_v39  ;;  %638 = vst [vmem:[%s2737_s18 + $0x68] sm:$0xff] %v613_v40 }
 0x111 PF: > { %v2780_v41 = vld [vmem:[%s2747_s7 + $0x10] sm:$0xff]  ;;  %v2783_v42 = vld [vmem:[%s2747_s7] sm:$0xff]  ;;  %v3512_v43 = vmov 0   ;;  %v2799_v47 = vld [vmem:[%s2747_s7 + $0x18] sm:$0xff]  ;;  %vm773_vm1 = vcmask 130048   ;;  %v3510_v59 = vmov 1  }
 0x112   : > { %2474 = vset.pattern.permute.xlu1 %v3512_v43  ;;  %2473 = vset.pattern.permute.xlu0 %v3512_v43  ;;  %v2510_v44 = vld [vmem:[%s3507_s5 + $0x4] ss:$12 sps:$4 sm:$0xff]   ;;  %v2512_v45 = vld [vmem:[%s3507_s5 + $0x8] ss:$12 sps:$4 sm:$0xff]   ;;  %v2513_v46 = vld [vmem:[%s3507_s5] ss:$12 sps:$4 sm:$0xff]  }
 0x113   : > { %1220 = vperm.xlu1 %2474, %v2780_v41   ;;  %1210 = vperm.xlu0 %2473, %v2783_v42   ;;  %v2802_v48 = vld [vmem:[%s2747_s7 + $0x8] sm:$0xff]  ;;  %v2514_v49 = vld [vmem:[%s2742_s30] sm:$0xff]   ;;  %v2516_v53 = vld [vmem:[%s2742_s30 + $0x10] sm:$0xff]   ;;  %v3514_v7 = vmov 2  }
 0x114   : > { %836 = vmatprep.subr.bf16.mxu0 %v2510_v44  ;;  %854 = vmatprep.mubr.bf16.mxu0 %v3512_v43  ;;  %v2515_v50 = vld [vmem:[%s2742_s30 + $0x8] sm:$0xff]   ;;  %v2813_v52 = vld [vmem:[%s2747_s7 + $0x20] sm:$0xff]  ;;  %v1207_v54 = vld [vmem:[%s2747_s7 + $0xf8] sm:$0xff] }
 0x115   : > { %2369 = vmatprep.subr.bf16.mxu1 %v2512_v45  ;;  %837 = vmatpush1.bf16.msra.mxu0 %v2513_v46  ;;  %v2810_v51 = vld [vmem:[%s2747_s7 + $0x28] sm:$0xff]  ;;  %v2825_v55 = vld [vmem:[%s2747_s7 + $0xf0] sm:$0xff]  ;;  %v2517_v56 = vld [vmem:[%s2742_s30 + $0x18] sm:$0xff]  }
 0x116   : > { %2370 = vmatpush3.bf16.msra.mxu1 %v2512_v45  ;;  %2371 = vmatprep.mubr.msk.bf16.mxu1 %vm773_vm1, %v2514_v49  ;;  %v2518_v57 = vld [vmem:[%s2742_s30 + $0x20] sm:$0xff]   ;;  %v2832_v58 = vld [vmem:[%s2747_s7 + $0x78] sm:$0xff]  ;;  %v2840_v60 = vld [vmem:[%s2747_s7 + $0xe8] sm:$0xff] }
 0x117   : > { %1225 = vperm.xlu1 %2474, %v2799_v47   ;;  %1215 = vperm.xlu0 %2473, %v2802_v48   ;;  %v2519_v61 = vld [vmem:[%s2742_s30 + $0x28] sm:$0xff]   ;;  %v1190_v62 = vld [vmem:[%s2747_s7 + $0x70] sm:$0xff]  ;;  %v2849_v0 = vld [vmem:[%s2747_s7 + $0x60] sm:$0xff] }
 0x118   : > { %2210 = vmatmul.mubr.msk.bf16.vlgmr.msra.gmra.mxu0 %vm773_vm1, %v2514_v49  ;;  %v2520_v63 = vld [vmem:[%s2742_s30 + $0x30] sm:$0xff]   ;;  %v2521_v2 = vld [vmem:[%s2742_s30 + $0x38] sm:$0xff]   ;;  %v2861_v3 = vld [vmem:[%s2742_s30 + $0x40] sm:$0xff]  }
 0x119   : > { %2372 = vmatmul.mubr.msk.bf16.vlgmr.msra.gmra.mxu1 %vm773_vm1, %v2515_v50  ;;  %864 = vmatprep.mubr.bf16.mxu0 %v3512_v43  ;;  %v2856_v1 = vld [vmem:[%s2747_s7 + $0xd0] sm:$0xff]  ;;  %v2864_v4 = vld [vmem:[%s2747_s7 + $0xc8] sm:$0xff]  ;;  %v2875_v5 = vld [vmem:[%s2747_s7 + $0x40] sm:$0xff] }
 0x11a   : > { %2375 = vmatprep.mubr.msk.bf16.mxu1 %vm773_vm1, %v2516_v53  ;;  %v2523_v6 = vld [vmem:[%s2742_s30 + $0x48] sm:$0xff]   ;;  %v2880_v8 = vld [vmem:[%s2742_s30 + $0x50] sm:$0xff]   ;;  %v1204_v11 = vld [vmem:[%s2747_s7 + $0xe0] sm:$0xff] }
 0x11b   : > { %1235 = vperm.xlu1 %2474, %v2810_v51   ;;  %1230 = vperm.xlu0 %2473, %v2813_v52   ;;  %v2885_v9 = vld [vmem:[%s2747_s7 + $0xb0] sm:$0xff]  ;;  %v2893_v10 = vld [vmem:[%s2747_s7 + $0xa8] sm:$0xff]  ;;  %v2897_v12 = vld [vmem:[%s2742_s30 + $0x58] sm:$0xff]  }
 0x11c   : > { %v2900_v13 = vld [vmem:[%s2742_s30 + $0x60] sm:$0xff]   ;;  %v2906_v14 = vld [vmem:[%s2747_s7 + $0x90] sm:$0xff]  ;;  %v2916_v15 = vld [vmem:[%s2747_s7 + $0x88] sm:$0xff] }
 0x11d   : > { %v2919_v16 = vld [vmem:[%s2742_s30 + $0x68] sm:$0xff]   ;;  %v2922_v17 = vld [vmem:[%s2742_s30 + $0x70] sm:$0xff]   ;;  %v2937_v19 = vld [vmem:[%s2742_s30 + $0x78] sm:$0xff]  }
 0x11e   : > { %v1189_v18 = vld [vmem:[%s2747_s7 + $0x68] sm:$0xff]  ;;  %v1203_v20 = vld [vmem:[%s2747_s7 + $0xd8] sm:$0xff]  ;;  %v1186_v21 = vld [vmem:[%s2747_s7 + $0x50] sm:$0xff] }
 0x11f   : > { %1365 = vperm.xlu1 %2474, %v1207_v54   ;;  %1360 = vperm.xlu0 %2473, %v2825_v55   ;;  %v2954_v22 = vld [vmem:[%s2747_s7 + $0xb8] sm:$0xff]  ;;  %v2959_v23 = vld [vmem:[%s2747_s7 + $0x30] sm:$0xff]  ;;  %v1200_v26 = vld [vmem:[%s2747_s7 + $0xc0] sm:$0xff] }
 0x120   : > { %2211 = vmatmul.mubr.msk.bf16.gmra.mxu0 %vm773_vm1, %v2515_v50  ;;  %v2969_v24 = vld [vmem:[%s2747_s7 + $0x98] sm:$0xff]  ;;  %v1185_v29 = vld [vmem:[%s2747_s7 + $0x48] sm:$0xff] }
 0x121   : > { %2376 = vmatmul.mubr.msk.bf16.gmra.mxu1 %vm773_vm1, %v2517_v56  ;;  %874 = vmatprep.mubr.bf16.mxu0 %v3512_v43  ;;  %v1187_v25 = vld [vmem:[%s2747_s7 + $0x58] sm:$0xff] }
 0x122   : > { %2379 = vmatprep.mubr.msk.bf16.mxu1 %vm773_vm1, %v2518_v57  ;;  %v1183_v32 = vld [vmem:[%s2747_s7 + $0x38] sm:$0xff] }
 0x123   : > { %2475 = vset.pattern.permute.xlu1 %v3510_v59  ;;  %1285 = vperm.xlu0 %2473, %v2832_v58  }
 0x124   : > { %1525 = vperm.xlu1 %2475, %v1207_v54  }
 0x127   : > { %1355 = vperm.xlu0 %2473, %v2840_v60  }
 0x128   : > { %2476 = vset.pattern.permute.xlu1 %v3512_v43  ;;  %2212 = vmatmul.mubr.msk.bf16.gmra.mxu0 %vm773_vm1, %v2516_v53 }
 0x129   : > { %2380 = vmatmul.mubr.msk.bf16.gmra.mxu1 %vm773_vm1, %v2519_v61  ;;  %1280 = vperm.xlu1 %2476, %v1190_v62  }
 0x12a   : > { %884 = vmatprep.mubr.bf16.mxu0 %v3512_v43  ;;  %2383 = vmatprep.mubr.msk.bf16.mxu1 %vm773_vm1, %v2520_v63 }
 0x12b   : > { %1270 = vperm.xlu0 %2473, %v2849_v0  }
 0x12d   : > { %2477 = vset.pattern.permute.xlu1 %v3510_v59 }
 0x12e   : > { %1457 = vperm.xlu1 %2477, %v1190_v62  }
 0x12f   : > { %1340 = vperm.xlu0 %2473, %v2856_v1  }
 0x130   : > { %2213 = vmatmul.mubr.msk.bf16.gmra.mxu0 %vm773_vm1, %v2517_v56 }
 0x131   : > { %2384 = vmatmul.mubr.msk.bf16.gmra.mxu1 %vm773_vm1, %v2521_v2  ;;  %894 = vmatprep.mubr.bf16.mxu0 %v3512_v43 }
 0x132   : > { %1461 = vperm.xlu1 %2477, %v2832_v58   ;;  %2387 = vmatprep.mubr.msk.bf16.mxu1 %vm773_vm1, %v2861_v3 }
 0x133   : > { %1335 = vperm.xlu0 %2473, %v2864_v4  }
 0x136   : > { %2478 = vset.pattern.permute.xlu1 %v3514_v7 }
 0x137   : > { %1717 = vperm.xlu1 %2478, %v1207_v54   ;;  %1250 = vperm.xlu0 %2473, %v2875_v5  }
 0x138   : > { %2214 = vmatmul.mubr.msk.bf16.gmra.mxu0 %vm773_vm1, %v2518_v57 }
 0x139   : > { %2388 = vmatmul.mubr.msk.bf16.gmra.mxu1 %vm773_vm1, %v2523_v6  ;;  %904 = vmatprep.mubr.bf16.mxu0 %v3512_v43 }
 0x13a   : > { %2391 = vmatprep.mubr.msk.bf16.mxu1 %vm773_vm1, %v2880_v8 }
 0x13b   : > { %1649 = vperm.xlu1 %2478, %v1190_v62   ;;  %1320 = vperm.xlu0 %2473, %v2885_v9  }
 0x13f   : > { %2479 = vset.pattern.permute.xlu1 %v3512_v43  ;;  %1315 = vperm.xlu0 %2473, %v2893_v10  }
 0x140   : > { %1350 = vperm.xlu1 %2479, %v1204_v11   ;;  %2215 = vmatmul.mubr.msk.bf16.gmra.mxu0 %vm773_vm1, %v2519_v61 }
 0x141   : > { %2392 = vmatmul.mubr.msk.bf16.gmra.mxu1 %vm773_vm1, %v2897_v12  ;;  %914 = vmatprep.mubr.bf16.mxu0 %v3512_v43 }
 0x142   : > { %2395 = vmatprep.mubr.msk.bf16.mxu1 %vm773_vm1, %v2900_v13 }
 0x143   : > { %1300 = vperm.xlu0 %2473, %v2906_v14  }
 0x144   : > { %2480 = vset.pattern.permute.xlu1 %v3510_v59 }
 0x145   : > { %1513 = vperm.xlu1 %2480, %v1204_v11  }
 0x147   : > { %1295 = vperm.xlu0 %2473, %v2916_v15  }
 0x148   : > { %2216 = vmatmul.mubr.msk.bf16.gmra.mxu0 %vm773_vm1, %v2520_v63 }
 0x149   : > { %2396 = vmatmul.mubr.msk.bf16.gmra.mxu1 %vm773_vm1, %v2919_v16  ;;  %1517 = vperm.xlu1 %2480, %v2840_v60  }
 0x14a   : > { %924 = vmatprep.mubr.bf16.mxu0 %v3512_v43  ;;  %2399 = vmatprep.mubr.msk.bf16.mxu1 %vm773_vm1, %v2922_v17 }
 0x14b   : > { %2506 = vset.pattern.permute.xlu0 %v3510_v59 }
 0x14c   : > { %1521 = vperm.xlu0 %2506, %v2825_v55  }
 0x14d   : > { %2481 = vset.pattern.permute.xlu1 %v3512_v43 }
 0x14e   : > { %1275 = vperm.xlu1 %2481, %v1189_v18  }
 0x150   : > { %1449 = vperm.xlu0 %2506, %v2849_v0   ;;  %2217 = vmatmul.mubr.msk.bf16.gmra.mxu0 %vm773_vm1, %v2521_v2  ;;  %v1196_v2 = vld [vmem:[%s2747_s7 + $0xa0] sm:$0xff] }
 0x151   : > { %2400 = vmatmul.mubr.msk.bf16.gmra.mxu1 %vm773_vm1, %v2937_v19  ;;  %934 = vmatprep.mubr.bf16.mxu0 %v3512_v43 }
 0x152   : > { %2482 = vset.pattern.permute.xlu1 %v3510_v59 }
 0x153   : > { %1453 = vperm.xlu1 %2482, %v1189_v18  }
 0x154   : > { %1509 = vperm.xlu0 %2506, %v1203_v20  }
 0x157   : > { %2483 = vset.pattern.permute.xlu1 %v3514_v7 }
 0x158   : > { %1705 = vperm.xlu1 %2483, %v1204_v11   ;;  %1441 = vperm.xlu0 %2506, %v1186_v21  }
 0x159   : > { %2218 = vmatmul.mubr.msk.bf16.gmra.mxu0 %vm773_vm1, %v2861_v3 }
 0x15a   : > { %944 = vmatprep.mubr.bf16.mxu0 %v3512_v43 }
 0x15c   : > { %1641 = vperm.xlu1 %2483, %v2849_v0   ;;  %1433 = vperm.xlu0 %2506, %v2875_v5  }
 0x160   : > { %1645 = vperm.xlu1 %2483, %v1189_v18   ;;  %1493 = vperm.xlu0 %2506, %v2954_v22  }
 0x161   : > { %2219 = vmatmul.mubr.msk.bf16.gmra.mxu0 %vm773_vm1, %v2523_v6 }
 0x162   : > { %954 = vmatprep.mubr.bf16.mxu0 %v3512_v43 }
 0x164   : > { %2484 = vset.pattern.permute.xlu1 %v3512_v43  ;;  %1425 = vperm.xlu0 %2506, %v2959_v23  }
 0x165   : > { %1345 = vperm.xlu1 %2484, %v1203_v20  }
 0x168   : > { %1417 = vperm.xlu0 %2506, %v2813_v52  }
 0x169   : > { %2220 = vmatmul.mubr.msk.bf16.gmra.mxu0 %vm773_vm1, %v2880_v8  ;;  %2485 = vset.pattern.permute.xlu1 %v3510_v59 }
 0x16a   : > { %1505 = vperm.xlu1 %2485, %v2856_v1   ;;  %964 = vmatprep.mubr.bf16.mxu0 %v3512_v43 }
 0x16c   : > { %1477 = vperm.xlu0 %2506, %v2969_v24  }
 0x16e   : > { %2486 = vset.pattern.permute.xlu1 %v3512_v43 }
 0x16f   : > { %1260 = vperm.xlu1 %2486, %v1186_v21  }
 0x170   : > { %1401 = vperm.xlu0 %2506, %v2783_v42  }
 0x171   : > { %2221 = vmatmul.mubr.msk.bf16.gmra.mxu0 %vm773_vm1, %v2897_v12 }
 0x172   : > { %974 = vmatprep.mubr.bf16.mxu0 %v3512_v43 }
 0x173   : > { %1265 = vperm.xlu1 %2486, %v1187_v25  }
 0x174   : > { %2508 = vset.pattern.permute.xlu0 %v3514_v7 }
 0x175   : > { %1713 = vperm.xlu0 %2508, %v2825_v55  }
 0x177   : > { %2487 = vset.pattern.permute.xlu1 %v3510_v59 }
 0x178   : > { %1445 = vperm.xlu1 %2487, %v1187_v25  }
 0x179   : > { %2222 = vmatmul.mubr.msk.bf16.gmra.mxu0 %vm773_vm1, %v2900_v13  ;;  %1653 = vperm.xlu0 %2508, %v2832_v58  }
 0x17a   : > { %984 = vmatprep.mubr.bf16.mxu0 %v3512_v43 }
 0x17c   : > { %2488 = vset.pattern.permute.xlu1 %v3514_v7 }
 0x17d   : > { %1701 = vperm.xlu1 %2488, %v1203_v20   ;;  %1709 = vperm.xlu0 %2508, %v2840_v60  }
 0x181   : > { %2223 = vmatmul.mubr.msk.bf16.gmra.mxu0 %vm773_vm1, %v2919_v16  ;;  %1633 = vperm.xlu1 %2488, %v1186_v21  }
 0x182   : > { %994 = vmatprep.mubr.bf16.mxu0 %v3512_v43  ;;  %1697 = vperm.xlu0 %2508, %v2856_v1  }
 0x185   : > { %2489 = vset.pattern.permute.xlu1 %v3512_v43 }
 0x186   : > { %1330 = vperm.xlu1 %2489, %v1200_v26   ;;  %1637 = vperm.xlu0 %2508, %v1187_v25  }
 0x189   : > { %2224 = vmatmul.mubr.msk.bf16.gmra.mxu0 %vm773_vm1, %v2922_v17 }
 0x18a   : > { %2490 = vset.pattern.permute.xlu1 %v3510_v59  ;;  %1004 = vmatprep.mubr.bf16.mxu0 %v3512_v43 }
 0x18b   : > { %1497 = vperm.xlu1 %2490, %v1200_v26   ;;  %1693 = vperm.xlu0 %2508, %v2864_v4  }
 0x18e   : > { %v3000_v27 = vpop.permute.xlu1 %1220  ;;  %v3002_v28 = vpop.permute.xlu0 %1210 }
 0x18f   : > { %3526 = vst [vmem:[#allocation4_spill] sm:$0xff] %v3000_v27  ;;  %1501 = vperm.xlu1 %2490, %v2864_v4   ;;  %1681 = vperm.xlu0 %2508, %v2885_v9  }
 0x191   : > { %2225 = vmatmul.mubr.msk.bf16.gmra.mxu0 %vm773_vm1, %v2937_v19 }
 0x192   : > { %v3009_v30 = vpop.permute.xlu1 %1225  ;;  %v3011_v31 = vpop.permute.xlu0 %1215 }
 0x193   : > { %3527 = vst [vmem:[#allocation5_spill] sm:$0xff] %v3009_v30  ;;  %3528 = vst [vmem:[#allocation6_spill] sm:$0xff] %v3011_v31  ;;  %2491 = vset.pattern.permute.xlu1 %v3512_v43  ;;  %1621 = vperm.xlu0 %2508, %v1183_v32  }
 0x194   : > { %1255 = vperm.xlu1 %2491, %v1185_v29  }
 0x196   : > { %v3015_v33 = vpop.permute.xlu1 %1235  ;;  %v3017_v34 = vpop.permute.xlu0 %1230 }
 0x197   : > { %3529 = vst [vmem:[#allocation7_spill] sm:$0xff] %v3015_v33  ;;  %1677 = vperm.xlu0 %2508, %v2893_v10  }
 0x198   : > { %2492 = vset.pattern.permute.xlu1 %v3510_v59 }
 0x199   : > { %1437 = vperm.xlu1 %2492, %v1185_v29  }
 0x19a   : > { %v3021_v35 = vpop.permute.xlu1 %1365  ;;  %v3023_v36 = vpop.permute.xlu0 %1360 }
 0x19b   : > { %3530 = vst [vmem:[#allocation8_spill] sm:$0xff] %v3021_v35  ;;  %1665 = vperm.xlu0 %2508, %v2906_v14  }
 0x19d   : > { %2493 = vset.pattern.permute.xlu1 %v3514_v7 }
 0x19e   : > { %1689 = vperm.xlu1 %2493, %v1200_v26   ;;  %v3027_v37 = vpop.permute.xlu0 %1285 }
 0x19f   : > { %v3029_v38 = vpop.permute.xlu1 %1525  ;;  %1605 = vperm.xlu0 %2508, %v2799_v47  }
 0x1a0   : > { %3531 = vst [vmem:[#allocation9_spill] sm:$0xff] %v3029_v38 }
 0x1a2   : > { %1625 = vperm.xlu1 %2493, %v2875_v5   ;;  %v3033_v39 = vpop.permute.xlu0 %1355 }
 0x1a3   : > { %1661 = vperm.xlu0 %2508, %v2916_v15  }
 0x1a4   : > { %v3036_v40 = vpop.permute.xlu1 %1280 }
 0x1a6   : > { %1629 = vperm.xlu1 %2493, %v1185_v29   ;;  %v3038_v44 = vpop.permute.xlu0 %1270 }
 0x1a9   : > { %v3040_v45 = vpop.permute.xlu1 %1457 }
 0x1aa   : > { %2494 = vset.pattern.permute.xlu1 %v3512_v43  ;;  %v3043_v46 = vpop.permute.xlu0 %1340 }
 0x1ab   : > { %3532 = vst [vmem:[#allocation10_spill] sm:$0xff] %v3043_v46  ;;  %1325 = vperm.xlu1 %2494, %v2954_v22   ;;  %v1192_v46 = vld [vmem:[%s2747_s7 + $0x80] sm:$0xff] }
 0x1ad   : > { %v3046_v49 = vpop.permute.xlu1 %1461 }
 0x1ae   : > { %v3048_v50 = vpop.permute.xlu0 %1335 }
 0x1af   : > { %2495 = vset.pattern.permute.xlu1 %v3510_v59 }
 0x1b0   : > { %1489 = vperm.xlu1 %2495, %v2885_v9  }
 0x1b2   : > { %v3052_v53 = vpop.permute.xlu1 %1717  ;;  %v3054_v54 = vpop.permute.xlu0 %1250 }
 0x1b3   : > { %3533 = vst [vmem:[#allocation11_spill] sm:$0xff] %v3052_v53 }
 0x1b4   : > { %2496 = vset.pattern.permute.xlu1 %v3512_v43 }
 0x1b5   : > { %1240 = vperm.xlu1 %2496, %v2959_v23  }
 0x1b6   : > { %v3058_v55 = vpop.permute.xlu1 %1649  ;;  %v3060_v56 = vpop.permute.xlu0 %1320 }
 0x1b7   : > { %3534 = vst [vmem:[#allocation12_spill] sm:$0xff] %v3060_v56 }
 0x1b9   : > { %1245 = vperm.xlu1 %2496, %v1183_v32  }
 0x1ba   : > { %v3062_v57 = vpop.permute.xlu0 %1315 }
 0x1bb   : > { %3535 = vst [vmem:[#allocation13_spill] sm:$0xff] %v3062_v57  ;;  %v3064_v58 = vpop.permute.xlu1 %1350 }
 0x1bc   : > { %3536 = vst [vmem:[#allocation14_spill] sm:$0xff] %v3064_v58 }
 0x1bd   : > { %2497 = vset.pattern.permute.xlu1 %v3510_v59 }
 0x1be   : > { %1429 = vperm.xlu1 %2497, %v1183_v32   ;;  %v3067_v60 = vpop.permute.xlu0 %1300 }
 0x1bf   : > { %3537 = vst [vmem:[#allocation15_spill] sm:$0xff] %v3067_v60 }
 0x1c0   : > { %v3069_v61 = vpop.permute.xlu1 %1513 }
 0x1c2   : > { %2498 = vset.pattern.permute.xlu1 %v3514_v7  ;;  %v3072_v62 = vpop.permute.xlu0 %1295 }
 0x1c3   : > { %3538 = vst [vmem:[#allocation16_spill] sm:$0xff] %v3072_v62  ;;  %1685 = vperm.xlu1 %2498, %v2954_v22  }
 0x1c4   : > { %v3075_v63 = vpop.permute.xlu1 %1517 }
 0x1c7   : > { %1617 = vperm.xlu1 %2498, %v2959_v23   ;;  %v3078_v0 = vpop.permute.xlu0 %1521 }
 0x1c9   : > { %v3080_v1 = vpop.permute.xlu1 %1275 }
 0x1cb   : > { %2499 = vset.pattern.permute.xlu1 %v3512_v43  ;;  %v3084_v3 = vpop.permute.xlu0 %1449 }
 0x1cc   : > { %1310 = vperm.xlu1 %2499, %v1196_v2  }
 0x1ce   : > { %v3086_v4 = vpop.permute.xlu1 %1453 }
 0x1cf   : > { %v3088_v5 = vpop.permute.xlu0 %1509 }
 0x1d0   : > { %2500 = vset.pattern.permute.xlu1 %v3510_v59 }
 0x1d1   : > { %1481 = vperm.xlu1 %2500, %v1196_v2  }
 0x1d3   : > { %v3091_v6 = vpop.permute.xlu1 %1705  ;;  %v3093_v8 = vpop.permute.xlu0 %1441 }
 0x1d4   : > { %3539 = vst [vmem:[#allocation17_spill] sm:$0xff] %v3091_v6 }
 0x1d5   : > { %1485 = vperm.xlu1 %2500, %v2893_v10  }
 0x1d7   : > { %v3096_v9 = vpop.permute.xlu1 %1641  ;;  %v3098_v11 = vpop.permute.xlu0 %1433 }
 0x1d8   : > { %v856_v12 = vpop.f32.mrf.mxu0 }
 0x1d9   : > { %v3100_v13 = vpop.f32.mrf.mxu1  ;;  %1421 = vperm.xlu1 %2500, %v2810_v51  }
 0x1da   : > { %3540 = vst [vmem:[#allocation18_spill] sm:$0xff] %v3100_v13  ;;  %v858_v16 = vpop.f32.mrf.mxu0  ;;  %v1368_v13 = vmul.f32 %v3002_v28, %v856_v12 }
 0x1db   : > { %v3103_v17 = vpop.f32.mrf.mxu1  ;;  %v3105_v18 = vpop.permute.xlu1 %1645 }
 0x1dc   : > { %3541 = vst [vmem:[#allocation19_spill] sm:$0xff] %v3103_v17  ;;  %v3107_v19 = vpop.permute.xlu0 %1493  ;;  %v3109_v20 = vpop.f32.mrf.mxu0 }
 0x1dd   : > { %3542 = vst [vmem:[#allocation20_spill] sm:$0xff] %v3107_v19  ;;  %3543 = vst [vmem:[#allocation21_spill] sm:$0xff] %v3109_v20  ;;  %v3111_v21 = vpop.f32.mrf.mxu1  ;;  %2501 = vset.pattern.permute.xlu1 %v3514_v7 }
 0x1de   : > { %3544 = vst [vmem:[#allocation22_spill] sm:$0xff] %v3111_v21  ;;  %1673 = vperm.xlu1 %2501, %v1196_v2   ;;  %v3114_v10 = vpop.f32.mrf.mxu0 }
 0x1df   : > { %3545 = vst [vmem:[#allocation23_spill] sm:$0xff] %v3114_v10  ;;  %v3116_v22 = vpop.f32.mrf.mxu1  ;;  %v3555_v10 = vmov 0  }
 0x1e0   : > { %3546 = vst [vmem:[#allocation24_spill] sm:$0xff] %v3116_v22  ;;  %v3118_v23 = vpop.permute.xlu0 %1425  ;;  %v3120_v25 = vpop.permute.xlu1 %1345 }
 0x1e1   : > { %3547 = vst [vmem:[#allocation25_spill] sm:$0xff] %v3120_v25  ;;  %v3122_v26 = vpop.f32.mrf.mxu0  ;;  %v3124_v29 = vpop.f32.mrf.mxu1 }
 0x1e2   : > { %3548 = vst [vmem:[#allocation26_spill] sm:$0xff] %v3122_v26  ;;  %1609 = vperm.xlu1 %2501, %v2813_v52  }
 0x1e3   : > { %v3127_v32 = vpop.f32.mrf.mxu0  ;;  %v3131_v2 = vpop.f32.mrf.mxu1 }
 0x1e4   : > { %3549 = vst [vmem:[#allocation27_spill] sm:$0xff] %v3127_v32  ;;  %v1418_v59 = vpop.permute.xlu0 %1417  ;;  %3551 = vst [vmem:[#allocation29_spill] sm:$0xff] %v3131_v2 }
 0x1e5   : > { %v3129_v43 = vpop.f32.mrf.mxu0  ;;  %v3133_v7 = vpop.permute.xlu1 %1505 }
 0x1e6   : > { %3550 = vst [vmem:[#allocation28_spill] sm:$0xff] %v3129_v43  ;;  %3552 = vst [vmem:[#allocation30_spill] sm:$0xff] %v3133_v7  ;;  %1613 = vperm.xlu1 %2501, %v2810_v51   ;;  %v3140_v20 = vpop.f32.mrf.mxu1 }
 0x1e7   : > { %v3136_v22 = vpop.f32.mrf.mxu0 }
 0x1e8   : > { %3553 = vst [vmem:[#allocation31_spill] sm:$0xff] %v3136_v22  ;;  %v3138_v17 = vpop.permute.xlu0 %1477  ;;  %v3148_v60 = vpop.f32.mrf.mxu1 }
 0x1e9   : > { %3554 = vst [vmem:[#allocation32_spill] sm:$0xff] %v3138_v17  ;;  %v876_v31 = vpop.f32.mrf.mxu0  ;;  %3557 = vst [vmem:[#allocation34_spill] sm:$0xff] %v3148_v60  ;;  %v3564_v60 = vmov 2  }
 0x1ea   : > { %v1372_v52 = vmul.f32 %v3017_v34, %v876_v31  ;;  %2502 = vset.pattern.permute.xlu1 %v3555_v10  ;;  %v1261_v62 = vpop.permute.xlu1 %1260  ;;  %v3561_v34 = vmov 1  }
 0x1eb   : > { %v878_v27 = vpop.f32.mrf.mxu0  ;;  %1305 = vperm.xlu1 %2502, %v2969_v24  }
 0x1ec   : > { %v1532_v26 = vmul.f32 %v1418_v59, %v878_v27  ;;  %v1402_v32 = vpop.permute.xlu0 %1401  ;;  %v2381_v27 = vpop.f32.mrf.mxu1 }
 0x1ed   : > { %v1528_v51 = vmul.f32 %v1402_v32, %v858_v16  ;;  %v3146_v21 = vpop.f32.mrf.mxu0 }
 0x1ee   : > { %3556 = vst [vmem:[#allocation33_spill] sm:$0xff] %v3146_v21  ;;  %v3150_v22 = vadd.f32 %v1532_v26, %v1372_v52  ;;  %v1266_v30 = vpop.permute.xlu1 %1265  ;;  %v3169_v32 = vpop.f32.mrf.mxu1 }
 0x1ef   : > { %v3152_v43 = vadd.f32 %v1528_v51, %v1368_v13  ;;  %v3154_v31 = vpop.f32.mrf.mxu0  ;;  %2503 = vset.pattern.permute.xlu1 %v3561_v34 }
 0x1f0   : > { %3558 = vst [vmem:[#allocation35_spill] sm:$0xff] %v3150_v22  ;;  %3560 = vst [vmem:[#allocation37_spill] sm:$0xff] %v3154_v31  ;;  %1473 = vperm.xlu1 %2503, %v2906_v14   ;;  %v3158_v28 = vpop.permute.xlu0 %1713  ;;  %v2382_v57 = vpop.f32.mrf.mxu1 }
 0x1f1   : > { %3559 = vst [vmem:[#allocation36_spill] sm:$0xff] %v3152_v43  ;;  %v3160_v59 = vpop.f32.mrf.mxu0 }
 0x1f2   : > { %v3182_v33 = vpop.f32.mrf.mxu1 }
 0x1f3   : > { %v3162_v12 = vpop.f32.mrf.mxu0  ;;  %v1446_v16 = vpop.permute.xlu1 %1445 }
 0x1f4   : > { %1409 = vperm.xlu1 %2503, %v2780_v41   ;;  %v3165_v26 = vpop.permute.xlu0 %1653 }
 0x1f5   : > { %v3167_v13 = vpop.f32.mrf.mxu0 }
 0x1f7   : > { %v3171_v52 = vpop.f32.mrf.mxu0 }
 0x1f8   : > { %1413 = vperm.xlu1 %2503, %v2799_v47   ;;  %v3174_v14 = vpop.permute.xlu1 %1701  ;;  %v3176_v43 = vpop.permute.xlu0 %1709 }
 0x1f9   : > { %3562 = vst [vmem:[#allocation38_spill] sm:$0xff] %v3174_v14  ;;  %v896_v51 = vpop.f32.mrf.mxu0  ;;  %3563 = vst [vmem:[#allocation39_spill] sm:$0xff] %v3176_v43 }
 0x1fa   : > { %v1376_v17 = vmul.f32 %v3054_v54, %v896_v51  ;;  %v3189_v54 = vpop.f32.mrf.mxu1 }
 0x1fb   : > { %v898_v22 = vpop.f32.mrf.mxu0 }
 0x1fc   : > { %v1536_v56 = vmul.f32 %v3098_v11, %v898_v22  ;;  %2504 = vset.pattern.permute.xlu1 %v3564_v60  ;;  %v1634_v19 = vpop.permute.xlu1 %1633 }
 0x1fd   : > { %v900_v2 = vpop.f32.mrf.mxu0  ;;  %1669 = vperm.xlu1 %2504, %v2969_v24   ;;  %v3186_v31 = vpop.permute.xlu0 %1697  ;;  %v1730_v25 = vmul.f32 %v2381_v27, %v1634_v19 }
 0x1fe   : > { %v3184_v47 = vadd.f32 %v1536_v56, %v1376_v17  ;;  %3565 = vst [vmem:[#allocation40_spill] sm:$0xff] %v3186_v31  ;;  %v1097_v17 = vpop.f32.mrf.mxu1 }
 0x1ff   : > { %v902_v21 = vpop.f32.mrf.mxu0 }
 0x200   : > { %v2386_v43 = vpop.f32.mrf.mxu1 }
 0x201   : > { %v906_v14 = vpop.f32.mrf.mxu0  ;;  %1601 = vperm.xlu1 %2504, %v2780_v41   ;;  %v3191_v11 = vpop.permute.xlu1 %1330 }
 0x202   : > { %v1378_v51 = vmul.f32 %v1261_v62, %v906_v14  ;;  %v1638_v56 = vpop.permute.xlu0 %1637 }
 0x203   : > { %v908_v22 = vpop.f32.mrf.mxu0  ;;  %v1731_v14 = vmul.f32 %v2382_v57, %v1638_v56 }
 0x204   : > { %v1538_v6 = vmul.f32 %v3093_v8, %v908_v22 }
 0x205   : > { %v910_v24 = vpop.f32.mrf.mxu0  ;;  %2505 = vset.pattern.permute.xlu1 %v3555_v10 }
 0x206   : > { %v1570_v7 = vadd.f32 %v1538_v6, %v1378_v51  ;;  %v1379_v31 = vmul.f32 %v1266_v30, %v910_v24  ;;  %1290 = vperm.xlu1 %2505, %v1192_v46   ;;  %v3196_v53 = vpop.permute.xlu1 %1497 }
 0x207   : > { %v912_v41 = vpop.f32.mrf.mxu0 }
 0x208   : > { %v3198_v38 = vadd.f32 %v1730_v25, %v1570_v7  ;;  %v1539_v62 = vmul.f32 %v1446_v16, %v912_v41  ;;  %v1732_v7 = vmul.f32 %v3096_v9, %v1097_v17  ;;  %v1100_v25 = vpop.f32.mrf.mxu1 }
 0x209   : > { %v916_v35 = vpop.f32.mrf.mxu0  ;;  %v1733_v22 = vmul.f32 %v3105_v18, %v1100_v25 }
 0x20a   : > { %3566 = vst [vmem:[#allocation41_spill] sm:$0xff] %v3198_v38  ;;  %v1571_v58 = vadd.f32 %v1539_v62, %v1379_v31  ;;  %v1380_v8 = vmul.f32 %v3038_v44, %v916_v35  ;;  %2507 = vset.pattern.permute.xlu1 %v3561_v34  ;;  %v3202_v10 = vpop.permute.xlu1 %1501  ;;  %v3216_v9 = vpop.f32.mrf.mxu1 }
 0x20b   : > { %v918_v19 = vpop.f32.mrf.mxu0  ;;  %1465 = vperm.xlu1 %2507, %v1192_v46   ;;  %3567 = vst [vmem:[#allocation42_spill] sm:$0xff] %v3216_v9 }
 0x20c   : > { %v3204_v30 = vadd.f32 %v1731_v14, %v1571_v58  ;;  %v1540_v6 = vmul.f32 %v3084_v3, %v918_v19  ;;  %v3223_v14 = vpop.f32.mrf.mxu1 }
 0x20d   : > { %v920_v27 = vpop.f32.mrf.mxu0  ;;  %3568 = vst [vmem:[#allocation43_spill] sm:$0xff] %v3223_v14 }
 0x20e   : > { %v1572_v31 = vadd.f32 %v1540_v6, %v1380_v8  ;;  %v1381_v35 = vmul.f32 %v3080_v1, %v920_v27  ;;  %v1735_v6 = vmul.f32 %v2386_v43, %v3165_v26  ;;  %v3237_v25 = vpop.f32.mrf.mxu1 }
 0x20f   : > { %v922_v44 = vpop.f32.mrf.mxu0  ;;  %1469 = vperm.xlu1 %2507, %v2916_v15   ;;  %v1256_v16 = vpop.permute.xlu1 %1255  ;;  %3570 = vst [vmem:[#allocation45_spill] sm:$0xff] %v3237_v25 }
 0x210   : > { %v3212_v34 = vadd.f32 %v1732_v7, %v1572_v31  ;;  %v1541_v58 = vmul.f32 %v3086_v4, %v922_v44  ;;  %v1377_v51 = vmul.f32 %v1256_v16, %v900_v2  ;;  %v1734_v7 = vmul.f32 %v3189_v54, %v3058_v55 }
 0x211   : > { %v926_v3 = vpop.f32.mrf.mxu0 }
 0x212   : > { %v1573_v24 = vadd.f32 %v1541_v58, %v1381_v35  ;;  %v1382_v1 = vmul.f32 %v3036_v40, %v926_v3 }
 0x213   : > { %v928_v56 = vpop.f32.mrf.mxu0  ;;  %1405 = vperm.xlu1 %2507, %v2802_v48  }
 0x214   : > { %v3219_v17 = vadd.f32 %v1733_v22, %v1573_v24  ;;  %v1542_v15 = vmul.f32 %v3040_v45, %v928_v56  ;;  %v1438_v41 = vpop.permute.xlu1 %1437 }
 0x215   : > { %v1537_v62 = vmul.f32 %v1438_v41, %v902_v21  ;;  %v930_v4 = vpop.f32.mrf.mxu0 }
 0x216   : > { %v1574_v2 = vadd.f32 %v1542_v15, %v1382_v1  ;;  %v1383_v27 = vmul.f32 %v3027_v37, %v930_v4  ;;  %v1694_v4 = vpop.permute.xlu0 %1693 }
 0x217   : > { %v1569_v8 = vadd.f32 %v1537_v62, %v1377_v51  ;;  %v932_v19 = vpop.f32.mrf.mxu0  ;;  %2509 = vset.pattern.permute.xlu1 %v3564_v60  ;;  %v2532_v51 = vld [vmem:[%s2749_s13 + $0x4] ss:$8 sps:$4 sm:$0xff]  }
 0x218   : > { %v1543_v40 = vmul.f32 %v3046_v49, %v932_v19  ;;  %1657 = vperm.xlu1 %2509, %v1192_v46   ;;  %v3241_v60 = vadd.f32 %v1734_v7, %v1574_v2  ;;  %v3248_v49 = vpop.f32.mrf.mxu1  ;;  %1944 = vmatprep.mubr.bf16.mxu1 %v2532_v51 }
 0x219   : > { %v3231_v45 = vpop.f32.mrf.mxu0  ;;  %v3233_v21 = vpop.permute.xlu1 %1689  ;;  %3573 = vst [vmem:[#allocation48_spill] sm:$0xff] %v3248_v49 }
 0x21a   : > { %3569 = vst [vmem:[#allocation44_spill] sm:$0xff] %v3231_v45  ;;  %v1575_v31 = vadd.f32 %v1543_v40, %v1383_v27  ;;  %v3258_v16 = vpop.f32.mrf.mxu1  ;;  %v1534_v27 = vmul.f32 %v3118_v23, %v3162_v12 }
 0x21b   : > { %v3239_v35 = vpop.f32.mrf.mxu0 }
 0x21c   : > { %3571 = vst [vmem:[#allocation46_spill] sm:$0xff] %v3239_v35  ;;  %v3243_v43 = vadd.f32 %v1735_v6, %v1575_v31  ;;  %1593 = vperm.xlu1 %2509, %v2783_v42   ;;  %v3298_v31 = vpop.permute.xlu0 %1681 }
 0x21d   : > { %v3246_v37 = vpop.f32.mrf.mxu0  ;;  %v1626_v46 = vpop.permute.xlu1 %1625 }
 0x21e   : > { %3572 = vst [vmem:[#allocation47_spill] sm:$0xff] %v3246_v37  ;;  %v1728_v54 = vmul.f32 %v1626_v46, %v3169_v32  ;;  %v3271_v32 = vpop.f32.mrf.mxu1 }
 0x21f   : > { %v3252_v26 = vpop.f32.mrf.mxu0 }
 0x220   : > { %3574 = vst [vmem:[#allocation49_spill] sm:$0xff] %v3252_v26  ;;  %1597 = vperm.xlu1 %2509, %v2802_v48   ;;  %v3265_v22 = vadd.f32 %v1728_v54, %v3184_v47  ;;  %v3281_v41 = vpop.f32.mrf.mxu1  ;;  %v1622_v18 = vpop.permute.xlu0 %1621 }
 0x221   : > { %v3256_v44 = vpop.f32.mrf.mxu0  ;;  %v1630_v58 = vpop.permute.xlu1 %1629 }
 0x222   : > { %3575 = vst [vmem:[#allocation50_spill] sm:$0xff] %v3256_v44  ;;  %v1729_v42 = vmul.f32 %v1630_v58, %v3182_v33  ;;  %3577 = vst [vmem:[#allocation52_spill] sm:$0xff] %v3265_v22 }
 0x223   : > { %v3262_v3 = vpop.f32.mrf.mxu0 }
 0x224   : > { %3576 = vst [vmem:[#allocation51_spill] sm:$0xff] %v3262_v3  ;;  %v3267_v24 = vadd.f32 %v1729_v42, %v1569_v8  ;;  %v3289_v8 = vpop.f32.mrf.mxu1 }
 0x225   : > { %v3269_v56 = vpop.f32.mrf.mxu0  ;;  %3579 = vst [vmem:[#allocation54_spill] sm:$0xff] %v3289_v8  ;;  %v3587_v8 = vld [vmem:[#allocation9_spill] sm:$0xff] }
 0x226   : > { %3578 = vst [vmem:[#allocation53_spill] sm:$0xff] %v3267_v24  ;;  %v3275_v1 = vpop.permute.xlu1 %1325  ;;  %v3300_v46 = vpop.f32.mrf.mxu1  ;;  %v3585_v24 = vld [vmem:[#allocation39_spill] sm:$0xff] }
 0x227   : > { %v3277_v15 = vpop.f32.mrf.mxu0 }
 0x228   : > { %v1145_v48 = vpop.f32.mrf.mxu1 }
 0x229   : > { %v3279_v33 = vpop.f32.mrf.mxu0 }
 0x22a   : > { %v3311_v14 = vpop.f32.mrf.mxu1 }
 0x22b   : > { %v3283_v47 = vpop.f32.mrf.mxu0  ;;  %v3285_v62 = vpop.permute.xlu1 %1489 }
 0x22c   : > { %v1148_v9 = vpop.f32.mrf.mxu1 }
 0x22d   : > { %v3287_v2 = vpop.f32.mrf.mxu0 }
 0x22f   : > { %v3291_v19 = vpop.f32.mrf.mxu0 }
 0x230   : > { %v1241_v6 = vpop.permute.xlu1 %1240 }
 0x231   : > { %v1374_v40 = vmul.f32 %v1241_v6, %v3160_v59  ;;  %v3296_v7 = vpop.f32.mrf.mxu0  ;;  %v1727_v59 = vmul.f32 %v3140_v20, %v1622_v18  ;;  %v1745_v18 = vmul.f32 %v1694_v4, %v1148_v9 }
 0x233   : > { %v1566_v54 = vadd.f32 %v1534_v27, %v1374_v40  ;;  %v3302_v58 = vpop.f32.mrf.mxu0 }
 0x234   : > { %v1246_v42 = vpop.permute.xlu1 %1245 }
 0x235   : > { %v3304_v51 = vpop.f32.mrf.mxu0  ;;  %v1375_v12 = vmul.f32 %v1246_v42, %v3167_v13 }
 0x237   : > { %v3306_v57 = vpop.f32.mrf.mxu0 }
 0x239   : > { %v976_v55 = vpop.f32.mrf.mxu0  ;;  %v1430_v23 = vpop.permute.xlu1 %1429 }
 0x23a   : > { %v1535_v6 = vmul.f32 %v1430_v23, %v3171_v52  ;;  %v1392_v40 = vmul.f32 %v3191_v11, %v976_v55  ;;  %v1744_v23 = vmul.f32 %v3233_v21, %v1145_v48  ;;  %v2401_v48 = vpop.f32.mrf.mxu1 }
 0x23b   : > { %v978_v27 = vpop.f32.mrf.mxu0  ;;  %v1750_v3 = vmul.f32 %v2401_v48, %v3158_v28 }
 0x23c   : > { %v1567_v45 = vadd.f32 %v1535_v6, %v1375_v12  ;;  %v1552_v35 = vmul.f32 %v3196_v53, %v978_v27  ;;  %v1161_v27 = vpop.f32.mrf.mxu1 }
 0x23d   : > { %v980_v49 = vpop.f32.mrf.mxu0 }
 0x23e   : > { %v3315_v26 = vadd.f32 %v1727_v59, %v1567_v45  ;;  %v1584_v37 = vadd.f32 %v1552_v35, %v1392_v40  ;;  %v3317_v25 = vpop.permute.xlu1 %1685  ;;  %v1393_v13 = vmul.f32 %v3048_v50, %v980_v49 }
 0x23f   : > { %v982_v20 = vpop.f32.mrf.mxu0 }
 0x240   : > { %3580 = vst [vmem:[#allocation55_spill] sm:$0xff] %v3315_v26  ;;  %v1553_v52 = vmul.f32 %v3202_v10, %v982_v20  ;;  %v3323_v45 = vadd.f32 %v1744_v23, %v1584_v37  ;;  %v3584_v26 = vld [vmem:[#allocation14_spill] sm:$0xff] }
 0x241   : > { %v986_v42 = vpop.f32.mrf.mxu0 }
 0x242   : > { %v1585_v11 = vadd.f32 %v1553_v52, %v1393_v13  ;;  %v1618_v55 = vpop.permute.xlu1 %1617  ;;  %3581 = vst [vmem:[#allocation56_spill] sm:$0xff] %v3323_v45 }
 0x243   : > { %v1726_v53 = vmul.f32 %v3124_v29, %v1618_v55  ;;  %v988_v12 = vpop.f32.mrf.mxu0 }
 0x244   : > { %v3325_v35 = vadd.f32 %v1745_v18, %v1585_v11  ;;  %v2402_v18 = vpop.f32.mrf.mxu1 }
 0x245   : > { %v3327_v59 = vadd.f32 %v1726_v53, %v1566_v54  ;;  %v990_v6 = vpop.f32.mrf.mxu0 }
 0x246   : > { %3582 = vst [vmem:[#allocation57_spill] sm:$0xff] %v3325_v35  ;;  %v1164_v23 = vpop.f32.mrf.mxu1 }
 0x247   : > { %3583 = vst [vmem:[#allocation58_spill] sm:$0xff] %v3327_v59  ;;  %v992_v9 = vpop.f32.mrf.mxu0  ;;  %v3333_v21 = vpop.permute.xlu1 %1310  ;;  %v1749_v45 = vmul.f32 %v3585_v24, %v1164_v23 }
 0x248   : > { %v1555_v59 = vmul.f32 %v3088_v5, %v992_v9  ;;  %v3591_v9 = vld [vmem:[#allocation17_spill] sm:$0xff] }
 0x249   : > { %v996_v49 = vpop.f32.mrf.mxu0 }
 0x24a   : > { %v1396_v22 = vmul.f32 %v3584_v26, %v996_v49  ;;  %v1748_v26 = vmul.f32 %v3591_v9, %v1161_v27  ;;  %v3592_v49 = vld [vmem:[#allocation10_spill] sm:$0xff]  ;;  %v3597_v27 = vld [vmem:[#allocation7_spill] sm:$0xff] }
 0x24b   : > { %v998_v29 = vpop.f32.mrf.mxu0  ;;  %v1394_v24 = vmul.f32 %v3592_v49, %v986_v42 }
 0x24c   : > { %v3335_v4 = vpop.permute.xlu1 %1481  ;;  %v1556_v10 = vmul.f32 %v3069_v61, %v998_v29  ;;  %v3588_v61 = vld [vmem:[#allocation11_spill] sm:$0xff] }
 0x24d   : > { %v1000_v37 = vpop.f32.mrf.mxu0  ;;  %v1751_v29 = vmul.f32 %v2402_v18, %v3588_v61 }
 0x24e   : > { %v1397_v50 = vmul.f32 %v3033_v39, %v1000_v37  ;;  %v3589_v37 = vld [vmem:[#allocation30_spill] sm:$0xff]  ;;  %v1588_v48 = vadd.f32 %v1556_v10, %v1396_v22  ;;  %v3596_v10 = vld [vmem:[#allocation33_spill] sm:$0xff] }
 0x24f   : > { %v1002_v40 = vpop.f32.mrf.mxu0 }
 0x250   : > { %v3337_v54 = vpop.permute.xlu1 %1485  ;;  %v1557_v52 = vmul.f32 %v3075_v63, %v1002_v40 }
 0x251   : > { %v1006_v20 = vpop.f32.mrf.mxu0 }
 0x252   : > { %v1398_v44 = vmul.f32 %v3023_v36, %v1006_v20  ;;  %v1589_v40 = vadd.f32 %v1557_v52, %v1397_v50  ;;  %v1554_v36 = vmul.f32 %v3589_v37, %v988_v12  ;;  %v3590_v20 = vld [vmem:[#allocation25_spill] sm:$0xff]  ;;  %v3601_v37 = vld [vmem:[#allocation34_spill] sm:$0xff] }
 0x253   : > { %v1008_v13 = vpop.f32.mrf.mxu0  ;;  %v1395_v28 = vmul.f32 %v3590_v20, %v990_v6  ;;  %v3595_v6 = vld [vmem:[#allocation37_spill] sm:$0xff]  ;;  %v3602_v20 = vld [vmem:[#allocation12_spill] sm:$0xff] }
 0x254   : > { %v1558_v11 = vmul.f32 %v3078_v0, %v1008_v13  ;;  %v1422_v55 = vpop.permute.xlu1 %1421  ;;  %v3586_v0 = vld [vmem:[#allocation8_spill] sm:$0xff]  ;;  %v1781_v50 = vadd.f32 %v1749_v45, %v1589_v40  ;;  %v1586_v12 = vadd.f32 %v1554_v36, %v1394_v24 }
 0x255   : > { %v1010_v53 = vpop.f32.mrf.mxu0  ;;  %v1587_v23 = vadd.f32 %v1555_v59, %v1395_v28  ;;  %v1533_v22 = vmul.f32 %v1422_v55, %v3595_v6  ;;  %v3598_v59 = vld [vmem:[#allocation29_spill] sm:$0xff]  ;;  %v3600_v40 = vld [vmem:[#allocation20_spill] sm:$0xff]  ;;  %v1390_v28 = vmul.f32 %v3602_v20, %v3296_v7  ;;  %v1548_v7 = vmul.f32 %v3335_v4, %v3283_v47 }
 0x256   : > { %v1590_v35 = vadd.f32 %v1558_v11, %v1398_v44  ;;  %v1399_v13 = vmul.f32 %v3586_v0, %v1010_v53  ;;  %v3593_v11 = vld [vmem:[#allocation40_spill] sm:$0xff]  ;;  %v3594_v53 = vld [vmem:[#allocation38_spill] sm:$0xff]  ;;  %v1780_v0 = vadd.f32 %v1748_v26, %v1588_v48  ;;  %v1551_v55 = vmul.f32 %v3600_v40, %v3306_v57 }
 0x257   : > { %v1012_v63 = vpop.f32.mrf.mxu0  ;;  %v1747_v18 = vmul.f32 %v3311_v14, %v3594_v53  ;;  %v3599_v14 = vpack.c.bf16 %v3243_v43, %v3241_v60  ;;  %v1391_v48 = vmul.f32 %v3275_v1, %v3304_v51  ;;  %v3603_v60 = vld [vmem:[#allocation35_spill] sm:$0xff]  ;;  %v1742_v57 = vmul.f32 %v3258_v16, %v3298_v31  ;;  %v1678_v51 = vpop.permute.xlu0 %1677  ;;  %v3605_v24 = vld [vmem:[#allocation32_spill] sm:$0xff]  ;;  %v3606_v31 = vld [vmem:[#allocation13_spill] sm:$0xff] }
 0x258   : > { %v1559_v38 = vmul.f32 %v3587_v8, %v1012_v63  ;;  %v1782_v44 = vadd.f32 %v1750_v3, %v1590_v35  ;;  %v1746_v8 = vmul.f32 %v3300_v46, %v3593_v11  ;;  %v1830_v3 = vpack.c.bf16 %v1781_v50, %v1780_v0  ;;  %v3611_v53 = vld [vmem:[#allocation56_spill] sm:$0xff]  ;;  %v3623_v40 = vld [vmem:[#allocation50_spill] sm:$0xff] }
 0x259   : > { %v1674_v39 = vpop.permute.xlu1 %1673  ;;  %v1779_v42 = vadd.f32 %v1747_v18, %v1587_v23  ;;  %v1550_v46 = vmul.f32 %v3285_v62, %v3302_v58  ;;  %v1743_v62 = vmul.f32 %v3281_v41, %v3317_v25  ;;  %v3604_v26 = vpack.c.bf16 %v3219_v17, %v3212_v34 }
 0x25a   : > { %v1591_v5 = vadd.f32 %v1559_v38, %v1399_v13  ;;  %v1373_v13 = vmul.f32 %v3597_v27, %v3596_v10  ;;  %v1778_v61 = vadd.f32 %v1746_v8, %v1586_v12  ;;  %v1583_v49 = vadd.f32 %v1551_v55, %v1391_v48  ;;  %v3624_v55 = vld [vmem:[#allocation15_spill] sm:$0xff] }
 0x25b   : > { %v1582_v9 = vadd.f32 %v1550_v46, %v1390_v28  ;;  %v1549_v1 = vmul.f32 %v3337_v54, %v3291_v19  ;;  %v1547_v23 = vmul.f32 %v3605_v24, %v3277_v15  ;;  %v1389_v34 = vmul.f32 %v3606_v31, %v3287_v2  ;;  %v3607_v19 = vld [vmem:[#allocation41_spill] sm:$0xff] }
 0x25c   : > { %v1783_v52 = vadd.f32 %v1751_v29, %v1591_v5  ;;  %v1565_v29 = vadd.f32 %v1533_v22, %v1373_v13  ;;  %v1829_v5 = vpack.c.bf16 %v1779_v42, %v1778_v61  ;;  %v1775_v17 = vadd.f32 %v1743_v62, %v1583_v49  ;;  %v3616_v22 = vld [vmem:[#allocation55_spill] sm:$0xff]  ;;  %v3626_v62 = vld [vmem:[#allocation42_spill] sm:$0xff] }
 0x25d   : > { %v1610_v63 = vpop.permute.xlu1 %1609  ;;  %v1388_v50 = vmul.f32 %v3333_v21, %v3279_v33  ;;  %v1740_v47 = vmul.f32 %v1674_v39, %v3271_v32  ;;  %v3608_v54 = vpack.c.bf16 %v3204_v30, %v3607_v19  ;;  %v1774_v11 = vadd.f32 %v1742_v57, %v1582_v9  ;;  %v1666_v33 = vpop.permute.xlu0 %1665  ;;  %v3613_v21 = vld [vmem:[#allocation53_spill] sm:$0xff]  ;;  %v3614_v32 = vld [vmem:[#allocation52_spill] sm:$0xff]  ;;  %v3619_v13 = vld [vmem:[#allocation51_spill] sm:$0xff] }
 0x25e   : > { %v1831_v38 = vpack.c.bf16 %v1783_v52, %v1782_v44  ;;  %v1724_v45 = vmul.f32 %v1610_v63, %v3598_v59  ;;  %v3609_v44 = vld [vmem:[#allocation54_spill] sm:$0xff]  ;;  %v1581_v8 = vadd.f32 %v1549_v1, %v1389_v34  ;;  %v3615_v39 = vpack.c.bf16 %v3613_v21, %v3614_v32  ;;  %v3632_v19 = vld [vmem:[#allocation47_spill] sm:$0xff] }
 0x25f   : > { %v1741_v52 = vmul.f32 %v1678_v51, %v3609_v44  ;;  %v1580_v15 = vadd.f32 %v1548_v7, %v1388_v50  ;;  %v1827_v12 = vpack.c.bf16 %v1775_v17, %v1774_v11  ;;  %v1386_v61 = vmul.f32 %v3624_v55, %v3623_v40  ;;  %v3629_v9 = vld [vmem:[#allocation26_spill] sm:$0xff]  ;;  %v3638_v32 = vld [vmem:[#allocation43_spill] sm:$0xff] }
 0x260   : > { %2287 = vmatprep.subr.bf16.mxu1 %v1831_v38  ;;  %v1756_v43 = vadd.f32 %v1724_v45, %v3603_v60  ;;  %v3617_v38 = vld [vmem:[#allocation58_spill] sm:$0xff]  ;;  %v3620_v45 = vld [vmem:[#allocation28_spill] sm:$0xff]  ;;  %v1738_v60 = vmul.f32 %v3626_v62, %v1666_v33 }
 0x261   : > { %2288 = vmatpush3.bf16.msra.mxu1 %v3599_v14  ;;  %v1614_v35 = vpop.permute.xlu1 %1613  ;;  %v1772_v63 = vadd.f32 %v1740_v47, %v1580_v15  ;;  %v1773_v0 = vadd.f32 %v1741_v52, %v1581_v8  ;;  %v3618_v10 = vpack.c.bf16 %v3616_v22, %v3617_v38  ;;  %v1606_v27 = vpop.permute.xlu0 %1605  ;;  %v3622_v14 = vld [vmem:[#allocation31_spill] sm:$0xff]  ;;  %v3634_v52 = vld [vmem:[#allocation49_spill] sm:$0xff]  ;;  %v3635_v15 = vld [vmem:[#allocation48_spill] sm:$0xff] }
 0x262   : > { %v1725_v36 = vmul.f32 %v1614_v35, %v3601_v37  ;;  %2289 = vmatprep.subr.bf16.mxu1 %v1830_v3  ;;  %v3621_v3 = vld [vmem:[#allocation5_spill] sm:$0xff]  ;;  %v2541_v62 = vld [vmem:[%s2749_s13 + $0x30] ss:$8 sps:$4 sm:$0xff]  }
 0x263   : > { %v1826_v6 = vpack.c.bf16 %v1773_v0, %v1772_v63  ;;  %v1371_v46 = vmul.f32 %v3621_v3, %v3620_v45  ;;  %v3637_v63 = vld [vmem:[#allocation44_spill] sm:$0xff] }
 0x264   : > { %v1757_v58 = vadd.f32 %v1725_v36, %v1565_v29  ;;  %v3625_v29 = vld [vmem:[#allocation22_spill] sm:$0xff] }
 0x265   : > { %2290 = vmatpush3.bf16.msra.mxu1 %v3604_v26  ;;  %v1723_v37 = vmul.f32 %v3625_v29, %v1606_v27  ;;  %v3630_v26 = vld [vmem:[#allocation4_spill] sm:$0xff]  ;;  %v1662_v50 = vpop.permute.xlu0 %1661  ;;  %v3641_v27 = vld [vmem:[#allocation6_spill] sm:$0xff] }
 0x266   : > { %v1818_v25 = vpack.c.bf16 %v1757_v58, %v1756_v43  ;;  %2291 = vmatprep.subr.bf16.mxu1 %v1829_v5  ;;  %v1306_v41 = vpop.permute.xlu1 %1305  ;;  %v3627_v43 = vld [vmem:[#allocation27_spill] sm:$0xff]  ;;  %v3628_v5 = vld [vmem:[#allocation45_spill] sm:$0xff]  ;;  %v1370_v49 = vmul.f32 %v3630_v26, %v3629_v9 }
 0x267   : > { %v1387_v16 = vmul.f32 %v1306_v41, %v3269_v56  ;;  %v3610_v56 = vld [vmem:[#allocation57_spill] sm:$0xff]  ;;  %v2551_v26 = vld [vmem:[%s2749_s13 + $0x74] ss:$8 sps:$4 sm:$0xff]  }
 0x268   : > { %v3612_v18 = vpack.c.bf16 %v3610_v56, %v3611_v53  ;;  %v2530_v29 = vld [vmem:[%s2749_s13] ss:$8 sps:$4 sm:$0xff]  }
 0x269   : > { %v1579_v4 = vadd.f32 %v1547_v23, %v1387_v16  ;;  %2292 = vmatpush3.bf16.msra.mxu1 %v3608_v54  ;;  %v3633_v54 = vld [vmem:[#allocation16_spill] sm:$0xff] }
 0x26a   : > { %2293 = vmatprep.subr.bf16.mxu1 %v3612_v18  ;;  %v1385_v44 = vmul.f32 %v3633_v54, %v3632_v19  ;;  %v3636_v18 = vld [vmem:[#allocation46_spill] sm:$0xff]  ;;  %v2550_v9 = vld [vmem:[%s2749_s13 + $0x60] ss:$8 sps:$4 sm:$0xff]  }
 0x26b   : > { %v1474_v2 = vpop.permute.xlu1 %1473 }
 0x26c   : > { %v1546_v42 = vmul.f32 %v1474_v2, %v3619_v13 }
 0x26d   : > { %2294 = vmatpush3.bf16.msra.mxu1 %v3615_v39 }
 0x26e   : > { %2295 = vmatprep.subr.bf16.mxu1 %v1827_v12  ;;  %v1578_v20 = vadd.f32 %v1546_v42, %v1386_v61  ;;  %v3642_v42 = vld [vmem:[#allocation19_spill] sm:$0xff] }
 0x26f   : > { %v1410_v30 = vpop.permute.xlu1 %1409 }
 0x270   : > { %v1530_v58 = vmul.f32 %v1410_v30, %v3627_v43  ;;  %v1770_v7 = vadd.f32 %v1738_v60, %v1578_v20  ;;  %v2536_v20 = vld [vmem:[%s2749_s13 + $0x24] ss:$8 sps:$4 sm:$0xff]   ;;  %v2544_v43 = vld [vmem:[%s2749_s13 + $0x40] ss:$8 sps:$4 sm:$0xff]  }
 0x271   : > { %2296 = vmatpush3.bf16.msra.mxu1 %v3618_v10  ;;  %v3640_v10 = vld [vmem:[#allocation21_spill] sm:$0xff] }
 0x272   : > { %2297 = vmatprep.subr.bf16.mxu1 %v1826_v6  ;;  %v1562_v51 = vadd.f32 %v1530_v58, %v1370_v49  ;;  %v3639_v6 = vld [vmem:[#allocation23_spill] sm:$0xff]  ;;  %v1369_v13 = vmul.f32 %v3641_v27, %v3640_v10  ;;  %v2542_v60 = vld [vmem:[%s2749_s13 + $0x44] ss:$8 sps:$4 sm:$0xff]  }
 0x273   : > { %v1414_v59 = vpop.permute.xlu1 %1413  ;;  %v2545_v58 = vld [vmem:[%s2749_s13 + $0x54] ss:$8 sps:$4 sm:$0xff]   ;;  %v2553_v49 = vld [vmem:[%s2749_s13 + $0x70] ss:$8 sps:$4 sm:$0xff]   ;;  %v1791_v10 = vld [vmem:[%s2737_s18 + $0x38] sm:$0xff] }
 0x274   : > { %v1531_v35 = vmul.f32 %v1414_v59, %v3622_v14 }
 0x275   : > { %2298 = vmatpush3.bf16.msra.mxu1 %v1818_v25  ;;  %v3631_v25 = vld [vmem:[#allocation18_spill] sm:$0xff] }
 0x276   : > { %v1563_v36 = vadd.f32 %v1531_v35, %v1371_v46  ;;  %v3643_v46 = vld [vmem:[#allocation24_spill] sm:$0xff] }
 0x277   : > { %v3644_v35 = vld [vmem:[#allocation36_spill] sm:$0xff] }
 0x278   : > { %v1755_v28 = vadd.f32 %v1723_v37, %v1563_v36  ;;  %v1670_v48 = vpop.permute.xlu1 %1669  ;;  %v2533_v37 = vld [vmem:[%s2749_s13 + $0x14] ss:$8 sps:$4 sm:$0xff]   ;;  %v2535_v36 = vld [vmem:[%s2749_s13 + $0x10] ss:$8 sps:$4 sm:$0xff]  }
 0x279   : > { %v1739_v57 = vmul.f32 %v3628_v5, %v1670_v48  ;;  %v2539_v48 = vld [vmem:[%s2749_s13 + $0x34] ss:$8 sps:$4 sm:$0xff]   ;;  %v2547_v5 = vld [vmem:[%s2749_s13 + $0x50] ss:$8 sps:$4 sm:$0xff]  }
 0x27b   : > { %v1771_v1 = vadd.f32 %v1739_v57, %v1579_v4  ;;  %v1737_v4 = vmul.f32 %v1662_v50, %v3635_v15  ;;  %v2548_v57 = vld [vmem:[%s2749_s13 + $0x64] ss:$8 sps:$4 sm:$0xff]   ;;  %v1786_v50 = vld [vmem:[%s2737_s18 + $0x10] sm:$0xff] }
 0x27c   : > { %v1602_v41 = vpop.permute.xlu1 %1601 }
 0x27d   : > { %v1722_v24 = vmul.f32 %v3631_v25, %v1602_v41  ;;  %v1825_v23 = vpack.c.bf16 %v1771_v1, %v1770_v7  ;;  %v1784_v1 = vld [vmem:[%s2737_s18] sm:$0xff] }
 0x27f   : > { %v1754_v16 = vadd.f32 %v1722_v24, %v1562_v51  ;;  %2299 = vmatprep.subr.bf16.mxu1 %v1825_v23  ;;  %v1785_v23 = vld [vmem:[%s2737_s18 + $0x8] sm:$0xff] }
 0x281   : > { %v1817_v31 = vpack.c.bf16 %v1755_v28, %v1754_v16  ;;  %v1291_v34 = vpop.permute.xlu1 %1290  ;;  %v2538_v28 = vld [vmem:[%s2749_s13 + $0x20] ss:$8 sps:$4 sm:$0xff]  }
 0x282   : > { %v1384_v12 = vmul.f32 %v1291_v34, %v3637_v63 }
 0x283   : > { %2300 = vmatpush3.bf16.msra.mxu1 %v1817_v31 }
 0x286   : > { %v1466_v17 = vpop.permute.xlu1 %1465 }
 0x287   : > { %v1544_v2 = vmul.f32 %v1466_v17, %v3636_v18 }
 0x289   : > { %v1576_v21 = vadd.f32 %v1544_v2, %v1384_v12  ;;  %v1789_v12 = vld [vmem:[%s2737_s18 + $0x28] sm:$0xff] }
 0x28a   : > { %v1470_v47 = vpop.permute.xlu1 %1469 }
 0x28b   : > { %v1545_v11 = vmul.f32 %v1470_v47, %v3634_v52  ;;  %v1787_v52 = vld [vmem:[%s2737_s18 + $0x18] sm:$0xff] }
 0x28d   : > { %v1577_v8 = vadd.f32 %v1545_v11, %v1385_v44 }
 0x28e   : > { %v1406_v56 = vpop.permute.xlu1 %1405 }
 0x28f   : > { %v1769_v53 = vadd.f32 %v1737_v4, %v1577_v8  ;;  %v1529_v22 = vmul.f32 %v1406_v56, %v3639_v6  ;;  %v1788_v56 = vld [vmem:[%s2737_s18 + $0x20] sm:$0xff] }
 0x291   : > { %v1561_v3 = vadd.f32 %v1529_v22, %v1369_v13 }
 0x293   : > { %v1658_v33 = vpop.permute.xlu1 %1657 }
 0x294   : > { %v1736_v39 = vmul.f32 %v1658_v33, %v3638_v32 }
 0x296   : > { %v1768_v0 = vadd.f32 %v1736_v39, %v1576_v21 }
 0x297   : > { %v1594_v30 = vpop.permute.xlu1 %1593 }
 0x298   : > { %v1824_v38 = vpack.c.bf16 %v1769_v53, %v1768_v0  ;;  %v1720_v59 = vmul.f32 %v1594_v30, %v3642_v42  ;;  %v1790_v0 = vld [vmem:[%s2737_s18 + $0x30] sm:$0xff] }
 0x29a   : > { %2301 = vmatprep.subr.bf16.mxu1 %v1824_v38  ;;  %v1752_v40 = vadd.f32 %v1720_v59, %v3644_v35 }
 0x29b   : > { %v1598_v45 = vpop.permute.xlu1 %1597 }
 0x29c   : > { %v1721_v14 = vmul.f32 %v1598_v45, %v3643_v46  ;;  %v1792_v45 = vld [vmem:[%s2737_s18 + $0x40] sm:$0xff] }
 0x29e   : > { %v1753_v55 = vadd.f32 %v1721_v14, %v1561_v3 }
 0x2a0   : > { %v1816_v61 = vpack.c.bf16 %v1753_v55, %v1752_v40  ;;  %v1793_v40 = vld [vmem:[%s2737_s18 + $0x48] sm:$0xff] }
 0x2a2   : > { %2302 = vmatpush3.bf16.msra.mxu1 %v1816_v61 }
 0x2a5   : > { %1945 = vmatmul.mubr.bf16.vlgmr.msra.gmra.mxu1 %v2530_v29 }
 0x2a6   : > { %1952 = vmatprep.mubr.bf16.mxu1 %v2533_v37 }
 0x2ad   : > { %1953 = vmatmul.mubr.bf16.gmra.mxu1 %v2535_v36  ;;  %v1794_v36 = vld [vmem:[%s2737_s18 + $0x50] sm:$0xff] }
 0x2ae   : > { %1960 = vmatprep.mubr.bf16.mxu1 %v2536_v20 }
 0x2b5   : > { %1961 = vmatmul.mubr.bf16.gmra.mxu1 %v2538_v28 }
 0x2b6   : > { %1968 = vmatprep.mubr.bf16.mxu1 %v2539_v48 }
 0x2bd   : > { %1969 = vmatmul.mubr.bf16.gmra.mxu1 %v2541_v62 }
 0x2be   : > { %1976 = vmatprep.mubr.bf16.mxu1 %v2542_v60  ;;  %v1795_v60 = vld [vmem:[%s2737_s18 + $0x58] sm:$0xff] }
 0x2c5   : > { %1977 = vmatmul.mubr.bf16.gmra.mxu1 %v2544_v43 }
 0x2c6   : > { %1984 = vmatprep.mubr.bf16.mxu1 %v2545_v58 }
 0x2cd   : > { %1985 = vmatmul.mubr.bf16.gmra.mxu1 %v2547_v5 }
 0x2ce   : > { %1992 = vmatprep.mubr.bf16.mxu1 %v2548_v57 }
 0x2d5   : > { %1993 = vmatmul.mubr.bf16.gmra.mxu1 %v2550_v9  ;;  %v1796_v9 = vld [vmem:[%s2737_s18 + $0x60] sm:$0xff] }
 0x2d6   : > { %2000 = vmatprep.mubr.bf16.mxu1 %v2551_v26 }
 0x2dd   : > { %2001 = vmatmul.mubr.bf16.gmra.mxu1 %v2553_v49 }
 0x365   : > { %v2303_v7 = vpop.f32.mrf.mxu1 }
 0x367   : > { %v2304_v41 = vpop.f32.mrf.mxu1 }
 0x368   : > { %v2305_v51 = vadd.f32 %v2304_v41, %v2303_v7  ;;  %v1797_v41 = vld [vmem:[%s2737_s18 + $0x68] sm:$0xff] }
 0x369   : > { %v2306_v25 = vpop.f32.mrf.mxu1 }
 0x36a   : > { %v2009_v24 = vadd.f32 %v2305_v51, %v1784_v1 }
 0x36b   : > { %v2307_v16 = vpop.f32.mrf.mxu1 }
 0x36c   : > { %2025 = vst [vmem:[%s2737_s18] sm:$0xff] %v2009_v24  ;;  %v2308_v31 = vadd.f32 %v2307_v16, %v2306_v25  ;;  %v1798_v16 = vld [vmem:[%s2737_s18 + $0x70] sm:$0xff] }
 0x36d   : > { %v2309_v34 = vpop.f32.mrf.mxu1 }
 0x36e   : > { %v2010_v17 = vadd.f32 %v2308_v31, %v1785_v23 }
 0x36f   : > { %v2310_v47 = vpop.f32.mrf.mxu1 }
 0x370   : > { %2026 = vst [vmem:[%s2737_s18 + $0x8] sm:$0xff] %v2010_v17  ;;  %v2311_v19 = vadd.f32 %v2310_v47, %v2309_v34  ;;  %v1799_v47 = vld [vmem:[%s2737_s18 + $0x78] sm:$0xff] }
 0x371   : > { %v2312_v54 = vpop.f32.mrf.mxu1 }
 0x372   : > { %v2011_v44 = vadd.f32 %v2311_v19, %v1786_v50 }
 0x373   : > { %v2313_v11 = vpop.f32.mrf.mxu1 }
 0x374   : > { %2027 = vst [vmem:[%s2737_s18 + $0x10] sm:$0xff] %v2011_v44  ;;  %v2314_v15 = vadd.f32 %v2313_v11, %v2312_v54 }
 0x375   : > { %v2315_v4 = vpop.f32.mrf.mxu1 }
 0x376   : > { %v2012_v8 = vadd.f32 %v2314_v15, %v1787_v52 }
 0x377   : > { %v2316_v53 = vpop.f32.mrf.mxu1 }
 0x378   : > { %2028 = vst [vmem:[%s2737_s18 + $0x18] sm:$0xff] %v2012_v8  ;;  %v2317_v18 = vadd.f32 %v2316_v53, %v2315_v4 }
 0x379   : > { %v2318_v2 = vpop.f32.mrf.mxu1 }
 0x37a   : > { %v2013_v63 = vadd.f32 %v2317_v18, %v1788_v56 }
 0x37b   : > { %v2319_v33 = vpop.f32.mrf.mxu1 }
 0x37c   : > { %2029 = vst [vmem:[%s2737_s18 + $0x20] sm:$0xff] %v2013_v63  ;;  %v2320_v21 = vadd.f32 %v2319_v33, %v2318_v2 }
 0x37d   : > { %v2321_v32 = vpop.f32.mrf.mxu1 }
 0x37e   : > { %v2014_v39 = vadd.f32 %v2320_v21, %v1789_v12 }
 0x37f   : > { %v2322_v30 = vpop.f32.mrf.mxu1 }
 0x380   : > { %2030 = vst [vmem:[%s2737_s18 + $0x28] sm:$0xff] %v2014_v39  ;;  %v2323_v6 = vadd.f32 %v2322_v30, %v2321_v32 }
 0x381   : > { %v2324_v22 = vpop.f32.mrf.mxu1 }
 0x382   : > { %v2015_v38 = vadd.f32 %v2323_v6, %v1790_v0 }
 0x383   : > { %v2325_v27 = vpop.f32.mrf.mxu1 }
 0x384   : > { %2031 = vst [vmem:[%s2737_s18 + $0x30] sm:$0xff] %v2015_v38  ;;  %v2326_v13 = vadd.f32 %v2325_v27, %v2324_v22 }
 0x385   : > { %v2327_v42 = vpop.f32.mrf.mxu1 }
 0x386   : > { %v2016_v59 = vadd.f32 %v2326_v13, %v1791_v10 }
 0x387   : > { %v2328_v3 = vpop.f32.mrf.mxu1 }
 0x388   : > { %2032 = vst [vmem:[%s2737_s18 + $0x38] sm:$0xff] %v2016_v59  ;;  %v2329_v46 = vadd.f32 %v2328_v3, %v2327_v42 }
 0x389   : > { %v2330_v14 = vpop.f32.mrf.mxu1 }
 0x38a   : > { %v2017_v35 = vadd.f32 %v2329_v46, %v1792_v45 }
 0x38b   : > { %v2331_v55 = vpop.f32.mrf.mxu1 }
 0x38c   : > { %2033 = vst [vmem:[%s2737_s18 + $0x40] sm:$0xff] %v2017_v35  ;;  %v2332_v61 = vadd.f32 %v2331_v55, %v2330_v14 }
 0x38d   : > { %v2333_v29 = vpop.f32.mrf.mxu1 }
 0x38e   : > { %v2018_v37 = vadd.f32 %v2332_v61, %v1793_v40 }
 0x38f   : > { %v2334_v20 = vpop.f32.mrf.mxu1 }
 0x390   : > { %2034 = vst [vmem:[%s2737_s18 + $0x48] sm:$0xff] %v2018_v37  ;;  %v2335_v28 = vadd.f32 %v2334_v20, %v2333_v29 }
 0x391   : > { %v2336_v48 = vpop.f32.mrf.mxu1 }
 0x392   : > { %v2019_v62 = vadd.f32 %v2335_v28, %v1794_v36 }
 0x393   : > { %v2337_v43 = vpop.f32.mrf.mxu1 }
 0x394   : > { %2035 = vst [vmem:[%s2737_s18 + $0x50] sm:$0xff] %v2019_v62  ;;  %v2338_v58 = vadd.f32 %v2337_v43, %v2336_v48 }
 0x395   : > { %v2339_v5 = vpop.f32.mrf.mxu1 }
 0x396   : > { %v2020_v57 = vadd.f32 %v2338_v58, %v1795_v60 }
 0x397   : > { %v2340_v26 = vpop.f32.mrf.mxu1 }
 0x398   : > { %2036 = vst [vmem:[%s2737_s18 + $0x58] sm:$0xff] %v2020_v57  ;;  %v2341_v49 = vadd.f32 %v2340_v26, %v2339_v5 }
 0x399   : > { %v2342_v7 = vpop.f32.mrf.mxu1 }
 0x39a   : > { %v2021_v1 = vadd.f32 %v2341_v49, %v1796_v9 }
 0x39b   : > { %v2343_v51 = vpop.f32.mrf.mxu1 }
 0x39c   : > { %2037 = vst [vmem:[%s2737_s18 + $0x60] sm:$0xff] %v2021_v1  ;;  %v2344_v25 = vadd.f32 %v2343_v51, %v2342_v7 }
 0x39d   : > { %v2345_v24 = vpop.f32.mrf.mxu1 }
 0x39e   : > { %v2022_v23 = vadd.f32 %v2344_v25, %v1797_v41 }
 0x39f   : > { %v2346_v31 = vpop.f32.mrf.mxu1 }
 0x3a0   : > { %2038 = vst [vmem:[%s2737_s18 + $0x68] sm:$0xff] %v2022_v23  ;;  %v2347_v34 = vadd.f32 %v2346_v31, %v2345_v24 }
 0x3a1   : > { %v2348_v17 = vpop.f32.mrf.mxu1 }
 0x3a2   : > { %v2023_v50 = vadd.f32 %v2347_v34, %v1798_v16 }
 0x3a3   : > { %v2349_v19 = vpop.f32.mrf.mxu1 }
 0x3a4   : > { %2039 = vst [vmem:[%s2737_s18 + $0x70] sm:$0xff] %v2023_v50  ;;  %v2350_v54 = vadd.f32 %v2349_v19, %v2348_v17 }
 0x3a6   : > { %v2024_v44 = vadd.f32 %v2350_v54, %v1799_v47 }
 0x3a8   : > { %2040 = vst [vmem:[%s2737_s18 + $0x78] sm:$0xff] %v2024_v44 }
 0x3a9 PF: > { %s16_s27 = sadd.s32 1, %s2608_s27   ;;  %s3645_s15 = sld [smem:[#allocation3_spill]] }
 0x3aa   : > { %p13_p13 = scmp.ge.s32.totalorder %s16_s27, 6   ;;  %s3646_s21 = smov %s2588_s22 }
 0x3ab   : > { %s3647_s22 = smov %s2699_s10  ;;  %s3648_s23 = smov %s2600_s25 }
 0x3ac   : > { %s3649_s24 = smov %s2604_s26  ;;  %s3650_s25 = smov %s3653_s28 }
 0x3ad   :  { %15 = sbr.rel (!%p13_p13) target bundleno = 6 (0x6), region = 130 }
 0x3af   : > { %s3651_s26 = smov %s3645_s15 }

</bundles_post_ra>
